<compile_context>
chip_gen: v6e
topology: v6e:2x2x1
jax: 0.10.0
libtpu: 0.0.40
codegen_flags: <defaults>
</compile_context>

<pallas_src>
import numpy as np
import jax
import jax.numpy as jnp
from jax.experimental import pallas as pl
from jax.experimental.pallas import tpu as pltpu


def generate_sketch_matrix(rand_h, rand_s, output_dim):
    """Dense equivalent of the module's sparse sketch matrix: [input_dim, output_dim]."""
    rand_h = rand_h.astype(np.int64)
    rand_s = rand_s.astype(np.float32)
    input_dim = len(rand_h)
    m = np.zeros((input_dim, output_dim), dtype=np.float32)
    m[np.arange(input_dim), rand_h] = rand_s
    return m


def _round_up(x, m):
    return ((x + m - 1) // m) * m


def _pick_hw_tile(hw, cap=1024):
    """Largest lane-dense (multiple-of-128) HW tile that wastes <~12.5% padding."""
    best = 128
    limit = max(_round_up(hw, 128), int(hw * 1.125))
    for t in (256, 512, 1024, 2048):
        if t <= cap and _round_up(hw, t) <= limit:
            best = t
    return best


def _pick_f_tile(fp, cap=512):
    best = 128
    for t in (256, 512, 1024):
        if t <= cap and fp % t == 0:
            best = t
    return best


def cbp_spectrum_kernel(x1_ref, x2_ref, a1_ref, a2_ref, o_ref):
    # x1_ref: (1, C1, T_HW)   x2_ref: (1, C2, T_HW)   NCHW slabs (no transpose needed)
    # a1_ref: (2, T_F, C1)    a2_ref: (2, T_F, C2)    fused sketch + rDFT rows [Re | Im]
    # o_ref : (1, 2*T_F, 1)   pooled [Re; Im] spectrum accumulator for this (b, f) cell
    x1 = x1_ref[0]
    x2 = x2_ref[0]

    # Fused count-sketch + forward half-spectrum DFT: frequency bins on sublanes,
    # spatial positions on lanes.  bf16 (or f32) operands, f32 accumulation.
    s1re = jnp.dot(a1_ref[0], x1, preferred_element_type=jnp.float32)  # (T_F, T_HW)
    s1im = jnp.dot(a1_ref[1], x1, preferred_element_type=jnp.float32)
    s2re = jnp.dot(a2_ref[0], x2, preferred_element_type=jnp.float32)
    s2im = jnp.dot(a2_ref[1], x2, preferred_element_type=jnp.float32)

    # Pool over the HW tile first, then do the +/- on the reduced vectors:
    # saves two full-tile VALU ops and avoids any large concat/reshape.
    rr = jnp.sum(s1re * s2re, axis=-1, keepdims=True)   # (T_F, 1)
    ii = jnp.sum(s1im * s2im, axis=-1, keepdims=True)
    ri = jnp.sum(s1re * s2im, axis=-1, keepdims=True)
    ir = jnp.sum(s1im * s2re, axis=-1, keepdims=True)

    @pl.when(pl.program_id(2) == 0)
    def _():
        o_ref[...] = jnp.zeros_like(o_ref)

    t_f = rr.shape[0]
    o_ref[0, :t_f, :] += rr - ii      # Re of the pooled product spectrum
    o_ref[0, t_f:, :] += ri + ir      # Im of the pooled product spectrum


def compact_bilinear_pooling(x1, x2, w1, w2, output_dim, *, block_hw=None,
                             block_f=None, compute_dtype=jnp.bfloat16):
    """x1: [B, C1, H, W], x2: [B, C2, H, W] (NCHW, like PyTorch). Returns [B, output_dim].

    Implements the sum_pool=True path of the module.
    """
    B, C1, H, W = x1.shape
    _, C2, _, _ = x2.shape
    HW = H * W
    D = output_dim
    F = D // 2 + 1                 # rFFT bins (Hermitian symmetry)
    Fp = _round_up(F, 128)

    T_F = block_f if block_f is not None else _pick_f_tile(Fp)
    assert Fp % T_F == 0 and T_F % 8 == 0, (Fp, T_F)
    if block_hw is not None:
        T_HW = block_hw
    else:
        T_HW = _pick_hw_tile(HW)
        # Keep the live f32 spectrum intermediates well inside VMEM on every gen.
        while 8 * T_F * T_HW * 4 > 24 * (1 << 20) and T_HW > 128:
            T_HW //= 2
    assert T_HW % 128 == 0, T_HW
    HWp = _round_up(HW, T_HW)
    n_f, n_hw = Fp // T_F, HWp // T_HW

    # Fused count-sketch + half-spectrum forward DFT rows, transposed to (F, C) so the
    # kernel can consume NCHW tiles directly.  Built host-side in float64, cast down.
    kf = np.arange(F)
    dd = np.arange(D)
    theta_fwd = 2.0 * np.pi * np.outer(dd, kf) / D            # (D, F)

    def fused_basis_t(w_np, C):
        w64 = np.asarray(w_np, dtype=np.float64)              # (C, D)
        a = np.zeros((2, Fp, C), dtype=np.float32)
        a[0, :F, :] = (w64 @ np.cos(theta_fwd)).T             # Re rows
        a[1, :F, :] = (-(w64 @ np.sin(theta_fwd))).T          # Im rows
        return jnp.asarray(a, dtype=compute_dtype)

    A1 = fused_basis_t(w1, C1)
    A2 = fused_basis_t(w2, C2)

    # Inverse half-spectrum DFT (applied to the *pooled* spectrum outside the kernel).
    # Weights: 1 for DC and (D even) Nyquist, 2 elsewhere.  Kept in f32.
    wts = np.full((F,), 2.0)
    wts[0] = 1.0
    if D % 2 == 0:
        wts[-1] = 1.0
    theta_inv = 2.0 * np.pi * np.outer(kf, np.arange(D)) / D  # (F, D)
    idft_cos = np.zeros((Fp, D), dtype=np.float32)
    idft_sin = np.zeros((Fp, D), dtype=np.float32)
    idft_cos[:F] = wts[:, None] * np.cos(theta_inv) / D
    idft_sin[:F] = -(wts[:, None] * np.sin(theta_inv)) / D
    idft_cos = jnp.asarray(idft_cos)
    idft_sin = jnp.asarray(idft_sin)

    isz = jnp.dtype(compute_dtype).itemsize
    vmem_need = (2 * (C1 + C2) * T_HW * isz          # x blocks (double-buffered)
                 + 2 * 2 * T_F * (C1 + C2) * isz     # basis blocks (double-buffered)
                 + 2 * 2 * T_F * 4                   # pooled-spectrum accumulator block
                 + 8 * T_F * T_HW * 4)               # f32 spectrum intermediates + temps
    vmem_limit = int(min(max(2 * vmem_need, 32 * (1 << 20)), 64 * (1 << 20)))

    cost = pl.CostEstimate(
        flops=2 * B * HWp * (C1 + C2) * 2 * Fp + 6 * B * HWp * Fp,
        transcendentals=0,
        bytes_accessed=(n_f * B * HWp * (C1 + C2) * isz      # x restreamed per F block
                        + B * 2 * Fp * (C1 + C2) * isz       # bases
                        + B * 2 * Fp * 4))                   # pooled spectrum out

    @jax.jit
    def run(x1, x2, A1, A2, idft_cos, idft_sin):
        # NCHW -> [B, C, HW] is a free reshape; zero-pad HW to a tile multiple
        # (zeros contribute nothing to the pooled sums); cast the dot operands.
        x1f = jnp.pad(x1.reshape(B, C1, HW), ((0, 0), (0, 0), (0, HWp - HW)))
        x2f = jnp.pad(x2.reshape(B, C2, HW), ((0, 0), (0, 0), (0, HWp - HW)))
        x1f = x1f.astype(compute_dtype)
        x2f = x2f.astype(compute_dtype)

        spec = pl.pallas_call(
            cbp_spectrum_kernel,
            out_shape=jax.ShapeDtypeStruct((B, 2 * Fp, 1), jnp.float32),
            grid_spec=pltpu.PrefetchScalarGridSpec(
                num_scalar_prefetch=0,
                grid=(B, n_f, n_hw),
                in_specs=[
                    pl.BlockSpec((1, C1, T_HW), lambda b, f, t: (b, 0, t)),
                    pl.BlockSpec((1, C2, T_HW), lambda b, f, t: (b, 0, t)),
                    pl.BlockSpec((2, T_F, C1), lambda b, f, t: (0, f, 0)),
                    pl.BlockSpec((2, T_F, C2), lambda b, f, t: (0, f, 0)),
                ],
                out_specs=pl.BlockSpec((1, 2 * T_F, 1), lambda b, f, t: (b, f, 0)),
            ),
            compiler_params=pltpu.CompilerParams(
                dimension_semantics=("parallel", "parallel", "arbitrary"),
                vmem_limit_bytes=vmem_limit,
                allow_input_fusion=[True, True, False, False]),
            cost_estimate=cost,
        )(x1f, x2f, A1, A2)

        # Un-interleave the per-F-block [Re; Im] layout, then apply the tiny inverse
        # half-spectrum DFT in f32 (linear, so valid after pooling).
        spec = spec[..., 0].reshape(B, n_f, 2, T_F)
        spec_re = spec[:, :, 0, :].reshape(B, Fp)
        spec_im = spec[:, :, 1, :].reshape(B, Fp)
        return spec_re @ idft_cos + spec_im @ idft_sin

    return run(x1, x2, A1, A2, idft_cos, idft_sin)
    # TODO(synk): sum_pool=False path (returning [B, H, W, D]) would apply the IDFT per
    # spatial location inside the kernel (output block [1, T_HW, D]); not wired up here.


def reference_cbp(x1, x2, w1, w2, output_dim):
    """Pure-JAX reference matching the PyTorch forward (FFT-based, sum_pool=True)."""
    B, C1, H, W = x1.shape
    C2 = x2.shape[1]
    x1f = jnp.transpose(x1, (0, 2, 3, 1)).reshape(-1, C1)
    x2f = jnp.transpose(x2, (0, 2, 3, 1)).reshape(-1, C2)
    s1 = x1f @ w1
    s2 = x2f @ w2
    f = jnp.fft.ifft(jnp.fft.fft(s1, axis=-1) * jnp.fft.fft(s2, axis=-1), axis=-1).real
    return f.reshape(B, H, W, output_dim).sum(axis=(1, 2))


if __name__ == "__main__":
    # Full-precision f32 matmuls outside the kernel so the f32 tolerance can be tight.
    jax.config.update("jax_default_matmul_precision", "highest")

    B, C1, C2, H, W, D = 2, 4, 8, 16, 16, 32

    # Deterministic sketch parameters, exactly as the module's __init__ does.
    np.random.seed(1); rand_h_1 = np.random.randint(D, size=C1)
    np.random.seed(3); rand_s_1 = 2 * np.random.randint(2, size=C1) - 1
    np.random.seed(5); rand_h_2 = np.random.randint(D, size=C2)
    np.random.seed(7); rand_s_2 = 2 * np.random.randint(2, size=C2) - 1
    w1 = generate_sketch_matrix(rand_h_1, rand_s_1, D)
    w2 = generate_sketch_matrix(rand_h_2, rand_s_2, D)

    key = jax.random.PRNGKey(0)
    k1, k2 = jax.random.split(key)
    bottom1 = jax.random.normal(k1, (B, C1, H, W), dtype=jnp.float32)
    bottom2 = jax.random.normal(k2, (B, C2, H, W), dtype=jnp.float32)

    ref = jax.block_until_ready(
        reference_cbp(bottom1, bottom2, jnp.asarray(w1), jnp.asarray(w2), D))
    scale = float(jnp.max(jnp.abs(ref))) + 1e-6

    # block_hw=128 / block_f=64 -> all three grid axes (batch, freq, HW reduction) > 1,
    # exercising the F tiling and the HW-accumulation path.
    out_f32 = jax.block_until_ready(compact_bilinear_pooling(
        bottom1, bottom2, w1, w2, D, block_hw=128, block_f=64,
        compute_dtype=jnp.float32))
    err_f32 = float(jnp.max(jnp.abs(out_f32 - ref))) / scale
    assert err_f32 < 2e-3, f"f32 mismatch: rel_err={err_f32}"

    out_bf16 = jax.block_until_ready(compact_bilinear_pooling(
        bottom1, bottom2, w1, w2, D, block_hw=128, block_f=64,
        compute_dtype=jnp.bfloat16))
    err_bf16 = float(jnp.max(jnp.abs(out_bf16 - ref))) / scale
    assert err_bf16 < 5e-2, f"bf16 mismatch: rel_err={err_bf16}"

    print("KERNEL_OK")
</pallas_src>

<mosaic_0001>
module attributes {stable_mosaic.version = 11 : i64} {
  func.func @cbp_spectrum_kernel(%arg0: i32, %arg1: i32, %arg2: i32, %arg3: memref<1x4x128xf32, #tpu.memory_space<vmem>>, %arg4: memref<1x8x128xf32, #tpu.memory_space<vmem>>, %arg5: memref<2x64x4xf32, #tpu.memory_space<vmem>>, %arg6: memref<2x64x8xf32, #tpu.memory_space<vmem>>, %arg7: memref<1x128x1xf32, #tpu.memory_space<vmem>>) attributes {dimension_semantics = [#tpu.dimension_semantics<parallel>, #tpu.dimension_semantics<parallel>, #tpu.dimension_semantics<arbitrary>], iteration_bounds = array<i64: 2, 2, 2>, scalar_prefetch = 0 : i64, scratch_operands = 0 : i64, tpu.core_type = #tpu.core_type<tc>, window_params = [{transform_indices = @transform_0, window_bounds = array<i64: 1, 4, 128>}, {transform_indices = @transform_1, window_bounds = array<i64: 1, 8, 128>}, {transform_indices = @transform_2, window_bounds = array<i64: 2, 64, 4>}, {transform_indices = @transform_3, window_bounds = array<i64: 2, 64, 8>}, {transform_indices = @transform_4, window_bounds = array<i64: 1, 128, 1>}]} {
    %c0 = arith.constant 0 : index
    %c0_0 = arith.constant 0 : index
    %c0_1 = arith.constant 0 : index
    %0 = vector.load %arg3[%c0, %c0_0, %c0_1] : memref<1x4x128xf32, #tpu.memory_space<vmem>>, vector<1x4x128xf32>
    %1 = vector.shape_cast %0 : vector<1x4x128xf32> to vector<4x128xf32>
    %c0_2 = arith.constant 0 : index
    %c0_3 = arith.constant 0 : index
    %c0_4 = arith.constant 0 : index
    %2 = vector.load %arg4[%c0_2, %c0_3, %c0_4] : memref<1x8x128xf32, #tpu.memory_space<vmem>>, vector<1x8x128xf32>
    %3 = vector.shape_cast %2 : vector<1x8x128xf32> to vector<8x128xf32>
    %c0_5 = arith.constant 0 : index
    %c0_6 = arith.constant 0 : index
    %c0_7 = arith.constant 0 : index
    %4 = vector.load %arg5[%c0_5, %c0_6, %c0_7] : memref<2x64x4xf32, #tpu.memory_space<vmem>>, vector<1x64x4xf32>
    %5 = vector.shape_cast %4 : vector<1x64x4xf32> to vector<64x4xf32>
    %cst = arith.constant dense<0.000000e+00> : vector<64x128xf32>
    %6 = tpu.matmul %5, %1, %cst {dimension_numbers = #tpu.dot_dimension_numbers<[1], [0], [0], [1], [0, 0, 1, 1], [], []>, precision = #tpu.contract_precision<fp32>} : vector<64x4xf32>, vector<4x128xf32>, vector<64x128xf32> -> vector<64x128xf32>
    %c1 = arith.constant 1 : index
    %c0_8 = arith.constant 0 : index
    %c0_9 = arith.constant 0 : index
    %7 = vector.load %arg5[%c1, %c0_8, %c0_9] : memref<2x64x4xf32, #tpu.memory_space<vmem>>, vector<1x64x4xf32>
    %8 = vector.shape_cast %7 : vector<1x64x4xf32> to vector<64x4xf32>
    %cst_10 = arith.constant dense<0.000000e+00> : vector<64x128xf32>
    %9 = tpu.matmul %8, %1, %cst_10 {dimension_numbers = #tpu.dot_dimension_numbers<[1], [0], [0], [1], [0, 0, 1, 1], [], []>, precision = #tpu.contract_precision<fp32>} : vector<64x4xf32>, vector<4x128xf32>, vector<64x128xf32> -> vector<64x128xf32>
    %c0_11 = arith.constant 0 : index
    %c0_12 = arith.constant 0 : index
    %c0_13 = arith.constant 0 : index
    %10 = vector.load %arg6[%c0_11, %c0_12, %c0_13] : memref<2x64x8xf32, #tpu.memory_space<vmem>>, vector<1x64x8xf32>
    %11 = vector.shape_cast %10 : vector<1x64x8xf32> to vector<64x8xf32>
    %cst_14 = arith.constant dense<0.000000e+00> : vector<64x128xf32>
    %12 = tpu.matmul %11, %3, %cst_14 {dimension_numbers = #tpu.dot_dimension_numbers<[1], [0], [0], [1], [0, 0, 1, 1], [], []>, precision = #tpu.contract_precision<fp32>} : vector<64x8xf32>, vector<8x128xf32>, vector<64x128xf32> -> vector<64x128xf32>
    %c1_15 = arith.constant 1 : index
    %c0_16 = arith.constant 0 : index
    %c0_17 = arith.constant 0 : index
    %13 = vector.load %arg6[%c1_15, %c0_16, %c0_17] : memref<2x64x8xf32, #tpu.memory_space<vmem>>, vector<1x64x8xf32>
    %14 = vector.shape_cast %13 : vector<1x64x8xf32> to vector<64x8xf32>
    %cst_18 = arith.constant dense<0.000000e+00> : vector<64x128xf32>
    %15 = tpu.matmul %14, %3, %cst_18 {dimension_numbers = #tpu.dot_dimension_numbers<[1], [0], [0], [1], [0, 0, 1, 1], [], []>, precision = #tpu.contract_precision<fp32>} : vector<64x8xf32>, vector<8x128xf32>, vector<64x128xf32> -> vector<64x128xf32>
    %16 = arith.mulf %6, %12 : vector<64x128xf32>
    %cst_19 = arith.constant dense<0.000000e+00> : vector<64xf32>
    %17 = vector.multi_reduction <add>, %16, %cst_19 [1] : vector<64x128xf32> to vector<64xf32>
    %18 = vector.shape_cast %17 : vector<64xf32> to vector<64x1xf32>
    %19 = arith.mulf %9, %15 : vector<64x128xf32>
    %cst_20 = arith.constant dense<0.000000e+00> : vector<64xf32>
    %20 = vector.multi_reduction <add>, %19, %cst_20 [1] : vector<64x128xf32> to vector<64xf32>
    %21 = vector.shape_cast %20 : vector<64xf32> to vector<64x1xf32>
    %22 = arith.mulf %6, %15 : vector<64x128xf32>
    %cst_21 = arith.constant dense<0.000000e+00> : vector<64xf32>
    %23 = vector.multi_reduction <add>, %22, %cst_21 [1] : vector<64x128xf32> to vector<64xf32>
    %24 = vector.shape_cast %23 : vector<64xf32> to vector<64x1xf32>
    %25 = arith.mulf %9, %12 : vector<64x128xf32>
    %cst_22 = arith.constant dense<0.000000e+00> : vector<64xf32>
    %26 = vector.multi_reduction <add>, %25, %cst_22 [1] : vector<64x128xf32> to vector<64xf32>
    %27 = vector.shape_cast %26 : vector<64xf32> to vector<64x1xf32>
    %c0_i32 = arith.constant 0 : i32
    %28 = arith.cmpi eq, %arg2, %c0_i32 : i32
    %29 = arith.extui %28 : i1 to i32
    %c0_i32_23 = arith.constant 0 : i32
    %30 = arith.cmpi ne, %29, %c0_i32_23 : i32
    scf.if %30 {
      %cst_35 = arith.constant 0.000000e+00 : f32
      %45 = vector.broadcast %cst_35 : f32 to vector<1x128x1xf32>
      %c0_36 = arith.constant 0 : index
      %c0_37 = arith.constant 0 : index
      %c0_38 = arith.constant 0 : index
      %46 = vector.load %arg7[%c0_36, %c0_37, %c0_38] : memref<1x128x1xf32, #tpu.memory_space<vmem>>, vector<1x128x1xf32>
      tpu.vector_store %arg7[%c0_36, %c0_37, %c0_38], %45 {strides = array<i32>} : memref<1x128x1xf32, #tpu.memory_space<vmem>>, vector<1x128x1xf32>,
    } else {
    }
    %c0_24 = arith.constant 0 : index
    %c0_25 = arith.constant 0 : index
    %c0_26 = arith.constant 0 : index
    %31 = vector.load %arg7[%c0_24, %c0_25, %c0_26] : memref<1x128x1xf32, #tpu.memory_space<vmem>>, vector<1x64x1xf32>
    %32 = vector.shape_cast %31 : vector<1x64x1xf32> to vector<64x1xf32>
    %33 = arith.subf %18, %21 : vector<64x1xf32>
    %34 = arith.addf %32, %33 : vector<64x1xf32>
    %c0_27 = arith.constant 0 : index
    %c0_28 = arith.constant 0 : index
    %c0_29 = arith.constant 0 : index
    %35 = vector.load %arg7[%c0_27, %c0_28, %c0_29] : memref<1x128x1xf32, #tpu.memory_space<vmem>>, vector<1x64x1xf32>
    %36 = vector.shape_cast %35 : vector<1x64x1xf32> to vector<64x1xf32>
    %37 = vector.shape_cast %34 : vector<64x1xf32> to vector<1x64x1xf32>
    tpu.vector_store %arg7[%c0_27, %c0_28, %c0_29], %37 {strides = array<i32>} : memref<1x128x1xf32, #tpu.memory_space<vmem>>, vector<1x64x1xf32>,
    %c0_30 = arith.constant 0 : index
    %c64 = arith.constant 64 : index
    %c0_31 = arith.constant 0 : index
    %38 = vector.load %arg7[%c0_30, %c64, %c0_31] : memref<1x128x1xf32, #tpu.memory_space<vmem>>, vector<1x64x1xf32>
    %39 = vector.shape_cast %38 : vector<1x64x1xf32> to vector<64x1xf32>
    %40 = arith.addf %24, %27 : vector<64x1xf32>
    %41 = arith.addf %39, %40 : vector<64x1xf32>
    %c0_32 = arith.constant 0 : index
    %c64_33 = arith.constant 64 : index
    %c0_34 = arith.constant 0 : index
    %42 = vector.load %arg7[%c0_32, %c64_33, %c0_34] : memref<1x128x1xf32, #tpu.memory_space<vmem>>, vector<1x64x1xf32>
    %43 = vector.shape_cast %42 : vector<1x64x1xf32> to vector<64x1xf32>
    %44 = vector.shape_cast %41 : vector<64x1xf32> to vector<1x64x1xf32>
    tpu.vector_store %arg7[%c0_32, %c64_33, %c0_34], %44 {strides = array<i32>} : memref<1x128x1xf32, #tpu.memory_space<vmem>>, vector<1x64x1xf32>,
    return
  }
  func.func @transform_0(%arg0: i32, %arg1: i32, %arg2: i32) -> (i32, i32, i32) {
    %c0_i32 = arith.constant 0 : i32
    %c0_i32_0 = arith.constant 0 : i32
    return %arg0, %c0_i32, %arg2 : i32, i32, i32
  }
  func.func @transform_1(%arg0: i32, %arg1: i32, %arg2: i32) -> (i32, i32, i32) {
    %c0_i32 = arith.constant 0 : i32
    %c0_i32_0 = arith.constant 0 : i32
    return %arg0, %c0_i32, %arg2 : i32, i32, i32
  }
  func.func @transform_2(%arg0: i32, %arg1: i32, %arg2: i32) -> (i32, i32, i32) {
    %c0_i32 = arith.constant 0 : i32
    %c0_i32_0 = arith.constant 0 : i32
    %c0_i32_1 = arith.constant 0 : i32
    return %c0_i32, %arg1, %c0_i32_0 : i32, i32, i32
  }
  func.func @transform_3(%arg0: i32, %arg1: i32, %arg2: i32) -> (i32, i32, i32) {
    %c0_i32 = arith.constant 0 : i32
    %c0_i32_0 = arith.constant 0 : i32
    %c0_i32_1 = arith.constant 0 : i32
    return %c0_i32, %arg1, %c0_i32_0 : i32, i32, i32
  }
  func.func @transform_4(%arg0: i32, %arg1: i32, %arg2: i32) -> (i32, i32, i32) {
    %c0_i32 = arith.constant 0 : i32
    %c0_i32_0 = arith.constant 0 : i32
    return %arg0, %arg1, %c0_i32 : i32, i32, i32
  }
}

</mosaic_0001>

<bundles_post_ra>
// kernel: squeeze.3
= control target key start
LH: loop header
LB: loop body
LE: loop exit
PB: predicated region body
PF: predicated region fallthrough
CT: control target
= control target key end

     0   :  { %vm12_vm0 = vcmask 523264   ;;  %s89_s0 = inlined_call_operand.vmem [shape: f32[2,256], index: 0, kind: input, shape index: {}]   ;;  %s90_s1 = inlined_call_operand.vmem [shape: f32[2,2,2,64], index: 1, kind: output, shape index: {}]  }
   0x1   :  { %v55_v0 = vld [vmem:[%s89_s0 + $0x2] sm:$0x3]  ;;  %v9_v1 = vld [vmem:[%s89_s0] sm:$0x3]  ;;  %s60_s0 = smov 64  }
   0x2   :  { %8 = vst [vmem:[#allocation1 + $0x8] sm:$0x3] %v55_v0  ;;  %10 = vst [vmem:[#allocation1] sm:$0x3] %v9_v1 }
   0x9   :  { %v19_v2 = vld.sshfl [vmem:[#allocation1] sm:$0xff pattern:$0x99999180]  }
   0xa   :  { %v11_v3 = vld [vmem:[#allocation1] sm:$0x3]   ;;  %20 = vrot.lane.b32.xlu0 %v19_v2, %s60_s0  ;;  %v15_v4 = vld [vmem:[#allocation1 + $0x8] sm:$0x3]  }
   0xb   :  { %13 = vst.msk [vmem:[#allocation0] ss:$16 sm:$0x3] %vm12_vm0, %v11_v3   ;;  %18 = vst.msk [vmem:[#allocation0 + $0x8] ss:$16 sm:$0x3] %vm12_vm0, %v15_v4  }
  0x7c   :  { %v21_v5 = vpop.permute.xlu0 %20  }
  0x7d   :  { %24 = vst.msk [vmem:[#allocation0 + $0x1] ss:$8 sm:$0xf] %vm12_vm0, %v21_v5  }
  0x84   :  { %v29_v6 = vld [vmem:[#allocation0] sm:$0x3]  ;;  %v34_v7 = vld [vmem:[#allocation0 + $0x8] sm:$0x3]  ;;  %v40_v8 = vld [vmem:[#allocation0 + $0x10] sm:$0x3] }
  0x85   :  { %32 = vst [vmem:[%s90_s1] sm:$0x3] %v29_v6  ;;  %56 = vst [vmem:[%s90_s1 + $0x2] sm:$0x3] %v34_v7  ;;  %v47_v9 = vld [vmem:[#allocation0 + $0x18] sm:$0x3] }
  0x86   :  { %57 = vst [vmem:[%s90_s1 + $0x4] sm:$0x3] %v40_v8  ;;  %58 = vst [vmem:[%s90_s1 + $0x6] sm:$0x3] %v47_v9 }

// kernel: squeeze.5
= control target key start
LH: loop header
LB: loop body
LE: loop exit
PB: predicated region body
PF: predicated region fallthrough
CT: control target
= control target key end

     0   :  { %s11_s10 = smov 3  ;;  %vm13_vm0 = vcmask 523264   ;;  %s32_s11 = smov 64   ;;  %vm20_vm1 = vcmask 1048064   ;;  %s52_s0 = inlined_call_operand.vmem [shape: f32[2,2,64], index: 0, kind: input, shape index: {}]   ;;  %s53_s1 = inlined_call_operand.vmem [shape: f32[2,128], index: 1, kind: output, shape index: {}]  }
   0x1   :  { %v30_v0 = vld [vmem:[%s52_s0 + $0x2] sm:$0x3]  ;;  %v9_v1 = vld [vmem:[%s52_s0] sm:$0x3]  ;;  %s16_s0 = smov 3 }
   0x2   :  { %8 = vst [vmem:[#allocation1 + $0x8] sm:$0x3] %v30_v0  ;;  %10 = vst [vmem:[#allocation1] sm:$0x3] %v9_v1 }
   0x9   :  { %v17_v2 = vld [vmem:[#allocation1 + $0x1] ss:$8 sm:%s16_s0]   ;;  %v12_v3 = vld [vmem:[#allocation1] ss:$8 sm:%s11_s10]  }
   0xa   :  { %18 = vrot.lane.b32.xlu0 %v17_v2, %s32_s11  ;;  %14 = vst.msk [vmem:[#allocation0] sm:$0x3] %vm13_vm0, %v12_v3  }
  0x7c   :  { %v19_v4 = vpop.permute.xlu0 %18  }
  0x7d   :  { %21 = vst.msk [vmem:[#allocation0] sm:$0x3] %vm20_vm1, %v19_v4  }
  0x84   :  { %v26_v5 = vld [vmem:[#allocation0] sm:$0x3] }
  0x85   :  { %29 = vst [vmem:[%s53_s1] sm:$0x3] %v26_v5 }

// kernel: run.1
= control target key start
LH: loop header
LB: loop body
LE: loop exit
PB: predicated region body
PF: predicated region fallthrough
CT: control target
= control target key end

     0   :  { %s4726_s15 = smov 0   ;;  %s4728_s16 = smov 0   ;;  %s5755_s0 = inlined_call_operand.vmem [shape: f32[2,4,256], index: 0, kind: input, shape index: {}]   ;;  %s5756_s1 = inlined_call_operand.vmem [shape: f32[2,8,256], index: 1, kind: input, shape index: {}]   ;;  %s5757_s2 = inlined_call_operand.vmem [shape: f32[2,128,4], index: 2, kind: input, shape index: {}]   ;;  %s5758_s3 = inlined_call_operand.vmem [shape: f32[2,128,8], index: 3, kind: input, shape index: {}]   ;;  %s5759_s4 = inlined_call_operand.vmem [shape: f32[2,256,1], index: 4, kind: output, shape index: {}]  }
   0x1   :  { %s4730_s17 = smov 0   ;;  %s4732_s18 = smov 0  }
   0x2   :  { %s4734_s19 = smov 0   ;;  %s4736_s20 = smov 0  }
   0x3   :  { %s4738_s21 = smov 0   ;;  %s4740_s22 = smov 0  }
   0x4   :  { %s4742_s23 = smov 0  }
   0x5 LB: > { %s26_s24 = sadd.s32 1, %s4686_s20  ;;  %s29_s25 = sadd.s32 1, %s4690_s21  ;;  %s4698_s23 = sphi %s4742_s23, %s14_s23   ;;  %s4694_s22 = sphi %s4740_s22, %s5792_s22   ;;  %s4690_s21 = sphi %s4738_s21, %s5791_s21   ;;  %s4686_s20 = sphi %s4736_s20, %s5790_s20   ;;  %s4682_s19 = sphi %s4734_s19, %s5789_s19   ;;  %s4678_s18 = sphi %s4732_s18, %s5788_s18   ;;  %s4674_s17 = sphi %s4730_s17, %s5787_s17   ;;  %s4670_s16 = sphi %s4728_s16, %s5786_s16   ;;  %s4666_s15 = sphi %s4726_s15, %s5785_s15  }
   0x6   : > { %p27_p0 = scmp.ge.s32.totalorder %s26_s24, 2  ;;  %p103_p1 = scmp.ne.s32.totalorder %s4670_s16, %s4666_s15 }
   0x7   : > { %p104_p2 = scmp.eq.s32.totalorder %s4698_s23, 0  ;;  %s33_s26 = sadd.s32 1, %s4694_s22 }
   0x8   : > { %s5794_s24 = smov (%p27_p0, %s26_s24), 0  ;;  %s5796_s25 = smov (!%p27_p0, %s29_s25), %s4690_s21 }
   0x9   : > { %p31_p3 = scmp.ge.s32.totalorder %s5796_s25, 2  ;;  %p4780_p4 = por %p104_p2, %p103_p1 }
   0xa   : > { %s96_s29 = sadd.s32 1, %s4670_s16  ;;  %p3965_p7 = scmp.ge.s32.totalorder %s4698_s23, 8 }
   0xb   : > { %s5798_s25 = smov (%p31_p3, %s5796_s25), 0  ;;  %s5800_s26 = smov (!%p31_p3, %s33_s26), %s4694_s22 }
   0xc   : > { %s93_s28 = ssub.s32 %s4690_s21, %s5798_s25  ;;  %p35_p5 = scmp.ge.s32.totalorder %s5800_s26, 2 }
   0xd   : > { %p94_p6 = scmp.eq.s32.totalorder %s93_s28, 0  ;;  %183 = sbr.rel (%p3965_p7) target bundleno = 42 (0x2a), region = 16 }
   0xe   : > { %s5802_s26 = smov (%p35_p5, %s5800_s26), 0 }
   0xf   : > { %s4793_s30 = scalar_select %p94_p6, %s4670_s16, %s96_s29  }
  0x12   : > { %208 = sbr.rel (!%p4780_p4) target bundleno = 30 (0x1e), region = 28  ;;  %s210_s5 = sand.u32 (%p4780_p4), 1, %s4670_s16  }
  0x13   : > { %s4001_s6 = sshll.u32 (%p4780_p4), %s4690_s21, 6  ;;  %s3966_s7 = sshll.u32 (%p4780_p4), %s210_s5, 7 }
  0x14   : > { %s4803_s10 = scalar_lea.vmem (%p4780_p4), %s5757_s2, %s4001_s6  ;;  %s212_s11 = scalar_lea.vmem (%p4780_p4), [#allocation2], %s3966_s7 }
  0x15   : > { %v274_v0 = vld [vmem:[%s4803_s10] sm:$0xff] (%p4780_p4)  ;;  %v276_v1 = vld [vmem:[%s4803_s10 + $0x8] sm:$0xff] (%p4780_p4)  ;;  %v278_v2 = vld [vmem:[%s4803_s10 + $0x10] sm:$0xff] (%p4780_p4) }
  0x16   : > { %275 = vst [vmem:[%s212_s11] sm:$0xff] (%p4780_p4), %v274_v0  ;;  %277 = vst [vmem:[%s212_s11 + $0x8] sm:$0xff] (%p4780_p4), %v276_v1  ;;  %v280_v3 = vld [vmem:[%s4803_s10 + $0x18] sm:$0xff] (%p4780_p4)  ;;  %v282_v4 = vld [vmem:[%s4803_s10 + $0x20] sm:$0xff] (%p4780_p4) }
  0x17   : > { %279 = vst [vmem:[%s212_s11 + $0x10] sm:$0xff] %v278_v2  ;;  %v284_v5 = vld [vmem:[%s4803_s10 + $0x28] sm:$0xff]  ;;  %281 = vst [vmem:[%s212_s11 + $0x18] sm:$0xff] %v280_v3  ;;  %v286_v6 = vld [vmem:[%s4803_s10 + $0x30] sm:$0xff] }
  0x18   : > { %283 = vst [vmem:[%s212_s11 + $0x20] sm:$0xff] %v282_v4  ;;  %285 = vst [vmem:[%s212_s11 + $0x28] sm:$0xff] %v284_v5  ;;  %v288_v7 = vld [vmem:[%s4803_s10 + $0x38] sm:$0xff]  ;;  %v290_v8 = vld [vmem:[%s4803_s10 + $0x80] sm:$0xff] }
  0x19   : > { %287 = vst [vmem:[%s212_s11 + $0x30] sm:$0xff] %v286_v6  ;;  %289 = vst [vmem:[%s212_s11 + $0x38] sm:$0xff] %v288_v7  ;;  %v292_v9 = vld [vmem:[%s4803_s10 + $0x88] sm:$0xff]  ;;  %v294_v10 = vld [vmem:[%s4803_s10 + $0x90] sm:$0xff] }
  0x1a   : > { %291 = vst [vmem:[%s212_s11 + $0x40] sm:$0xff] %v290_v8  ;;  %v296_v11 = vld [vmem:[%s4803_s10 + $0x98] sm:$0xff]  ;;  %293 = vst [vmem:[%s212_s11 + $0x48] sm:$0xff] %v292_v9  ;;  %v298_v12 = vld [vmem:[%s4803_s10 + $0xa0] sm:$0xff] }
  0x1b   : > { %295 = vst [vmem:[%s212_s11 + $0x50] sm:$0xff] %v294_v10  ;;  %297 = vst [vmem:[%s212_s11 + $0x58] sm:$0xff] %v296_v11  ;;  %v300_v13 = vld [vmem:[%s4803_s10 + $0xa8] sm:$0xff]  ;;  %v302_v14 = vld [vmem:[%s4803_s10 + $0xb0] sm:$0xff] }
  0x1c   : > { %299 = vst [vmem:[%s212_s11 + $0x60] sm:$0xff] %v298_v12  ;;  %301 = vst [vmem:[%s212_s11 + $0x68] sm:$0xff] %v300_v13  ;;  %v304_v15 = vld [vmem:[%s4803_s10 + $0xb8] sm:$0xff] }
  0x1d   : > { %303 = vst [vmem:[%s212_s11 + $0x70] sm:$0xff] %v302_v14  ;;  %305 = vst [vmem:[%s212_s11 + $0x78] sm:$0xff] %v304_v15 }
  0x1e PF: > { %311 = sbr.rel (!%p4780_p4) target bundleno = 42 (0x2a), region = 66  ;;  %s313_s12 = sand.u32 (%p4780_p4), 1, %s4670_s16  }
  0x1f   : > { %s4002_s13 = sshll.u32 (%p4780_p4), %s4690_s21, 6  ;;  %s3969_s14 = sshll.u32 (%p4780_p4), %s313_s12, 7 }
  0x20   : > { %s4828_s5 = scalar_lea.vmem (%p4780_p4), %s5758_s3, %s4002_s13  ;;  %s315_s27 = scalar_lea.vmem (%p4780_p4), [#allocation3], %s3969_s14 }
  0x21   : > { %v377_v16 = vld [vmem:[%s4828_s5] sm:$0xff] (%p4780_p4)  ;;  %v379_v17 = vld [vmem:[%s4828_s5 + $0x8] sm:$0xff] (%p4780_p4)  ;;  %v381_v18 = vld [vmem:[%s4828_s5 + $0x10] sm:$0xff] (%p4780_p4) }
  0x22   : > { %378 = vst [vmem:[%s315_s27] sm:$0xff] (%p4780_p4), %v377_v16  ;;  %380 = vst [vmem:[%s315_s27 + $0x8] sm:$0xff] (%p4780_p4), %v379_v17  ;;  %v383_v19 = vld [vmem:[%s4828_s5 + $0x18] sm:$0xff] (%p4780_p4)  ;;  %v385_v20 = vld [vmem:[%s4828_s5 + $0x20] sm:$0xff] (%p4780_p4) }
  0x23   : > { %382 = vst [vmem:[%s315_s27 + $0x10] sm:$0xff] %v381_v18  ;;  %v387_v21 = vld [vmem:[%s4828_s5 + $0x28] sm:$0xff]  ;;  %384 = vst [vmem:[%s315_s27 + $0x18] sm:$0xff] %v383_v19  ;;  %v389_v22 = vld [vmem:[%s4828_s5 + $0x30] sm:$0xff] }
  0x24   : > { %386 = vst [vmem:[%s315_s27 + $0x20] sm:$0xff] %v385_v20  ;;  %388 = vst [vmem:[%s315_s27 + $0x28] sm:$0xff] %v387_v21  ;;  %v391_v23 = vld [vmem:[%s4828_s5 + $0x38] sm:$0xff]  ;;  %v393_v24 = vld [vmem:[%s4828_s5 + $0x80] sm:$0xff] }
  0x25   : > { %390 = vst [vmem:[%s315_s27 + $0x30] sm:$0xff] %v389_v22  ;;  %392 = vst [vmem:[%s315_s27 + $0x38] sm:$0xff] %v391_v23  ;;  %v395_v25 = vld [vmem:[%s4828_s5 + $0x88] sm:$0xff]  ;;  %v397_v26 = vld [vmem:[%s4828_s5 + $0x90] sm:$0xff] }
  0x26   : > { %394 = vst [vmem:[%s315_s27 + $0x40] sm:$0xff] %v393_v24  ;;  %v399_v27 = vld [vmem:[%s4828_s5 + $0x98] sm:$0xff]  ;;  %396 = vst [vmem:[%s315_s27 + $0x48] sm:$0xff] %v395_v25  ;;  %v401_v28 = vld [vmem:[%s4828_s5 + $0xa0] sm:$0xff] }
  0x27   : > { %398 = vst [vmem:[%s315_s27 + $0x50] sm:$0xff] %v397_v26  ;;  %400 = vst [vmem:[%s315_s27 + $0x58] sm:$0xff] %v399_v27  ;;  %v403_v29 = vld [vmem:[%s4828_s5 + $0xa8] sm:$0xff]  ;;  %v405_v30 = vld [vmem:[%s4828_s5 + $0xb0] sm:$0xff] }
  0x28   : > { %402 = vst [vmem:[%s315_s27 + $0x60] sm:$0xff] %v401_v28  ;;  %404 = vst [vmem:[%s315_s27 + $0x68] sm:$0xff] %v403_v29  ;;  %v407_v31 = vld [vmem:[%s4828_s5 + $0xb8] sm:$0xff] }
  0x29   : > { %406 = vst [vmem:[%s315_s27 + $0x70] sm:$0xff] %v405_v30  ;;  %408 = vst [vmem:[%s315_s27 + $0x78] sm:$0xff] %v407_v31 }
  0x2a PF: > { %p3972_p8 = scmp.ge.s32.totalorder %s4698_s23, 1  ;;  %p413_p9 = scmp.lt.s32.totalorder %s4698_s23, 9 }
  0x2c   : > { %p414_p10 = pnand %p3972_p8, %p413_p9 }
  0x2e   : > { %417 = sbr.rel (%p414_p10) target bundleno = 642 (0x282), region = 104 }
  0x33   : > { %p476_p11 = scmp.lt.s32.totalorder %s4682_s19, 1  ;;  %p478_p12 = scmp.lt.s32.totalorder %s4674_s17, 1  ;;  %vm539_vm0 = vcmask 1043456   ;;  %vm514_vm1 = vcmask 31744   ;;  %vm2078_vm2 = vcmask 64512  }
  0x34   : > { %s3979_s6 = sshll.u32 %s4678_s18, 4  ;;  %s420_s7 = sand.u32 1, %s4666_s15  }
  0x35   : > { %s5804_s19 = smov (!%p476_p11, %s4682_s19), 1  ;;  %p497_p13 = scmp.lt.s32.totalorder %s3979_s6, 31 }
  0x36   : > { %s479_s8 = scalar_select %p478_p12, %s4674_s17, 1 }
  0x37   : > { %s3975_s9 = sshll.u32 %s5804_s19, 1  ;;  %s3980_s11 = sshll.u32 %s5804_s19, 5 }
  0x38   : > { %s4854_s10 = sadd.s32 %s3975_s9, %s479_s8  ;;  %s4857_s13 = sshll.u32 %s420_s7, 7 }
  0x39   : > { %s3976_s12 = sshll.u32 %s4854_s10, 2  ;;  %s5806_s6 = smov (!%p497_p13, %s3979_s6), 31 }
  0x3a   : > { %s483_s29 = scalar_lea.vmem %s5755_s0, %s3976_s12  ;;  %s4863_s15 = scalar_lea.vmem [#allocation2], %s4857_s13 }
  0x3b   : > { %v504_v32 = vld [vmem:[%s483_s29] sm:$0xf]  ;;  %v507_v34 = vld [vmem:[%s4863_s15 + $0x8] sm:$0xff]  ;;  %v508_v38 = vld [vmem:[%s4863_s15 + $0x10] sm:$0xff]  ;;  %s500_s18 = sadd.s32 %s3980_s11, %s5806_s6  ;;  %s3978_s7 = sshll.u32 %s4854_s10, 3 }
  0x3c   : > { %v506_v33 = vld [vmem:[%s4863_s15] sm:$0xff]  ;;  %v541_v35 = vsel %vm539_vm0, %v504_v32, 0  ;;  %v519_v37 = vsel %vm514_vm1, %v507_v34, 0  ;;  %v509_v39 = vld [vmem:[%s4863_s15 + $0x18] sm:$0xff]  ;;  %v522_v43 = vsel %vm514_vm1, %v508_v38, 0  ;;  %v511_v45 = vld [vmem:[%s4863_s15 + $0x28] sm:$0xff]  ;;  %s491_s10 = scalar_lea.vmem %s5756_s1, %s3978_s7 }
  0x3d   : > { %v516_v36 = vsel %vm514_vm1, %v506_v33, 0  ;;  %v4871_v40 = vand.u32 4294901760, %v541_v35  ;;  %v4875_v42 = vand.u32 4294901760, %v519_v37  ;;  %v510_v44 = vld [vmem:[%s4863_s15 + $0x20] sm:$0xff]  ;;  %s3981_s19 = sshll.u32 %s500_s18, 3  ;;  %v4880_v46 = vand.u32 4294901760, %v522_v43 }
  0x3e   : > { %v4873_v41 = vand.u32 4294901760, %v516_v36  ;;  %v525_v47 = vsel %vm514_vm1, %v509_v39, 0  ;;  %v528_v48 = vsel %vm514_vm1, %v510_v44, 0  ;;  %v531_v49 = vsel %vm514_vm1, %v511_v45, 0  ;;  %v512_v50 = vld [vmem:[%s4863_s15 + $0x30] sm:$0xff]  ;;  %s4889_s6 = scalar_lea.vmem %s5759_s4, %s3981_s19  ;;  %v513_v11 = vld [vmem:[%s4863_s15 + $0x38] sm:$0xff] }
  0x3f   : > { %4219 = vmatprep.subr.mxu0 %v4871_v40  ;;  %v4896_v52 = vsub.f32 %v519_v37, %v4875_v42  ;;  %v4898_v53 = vand.u32 4294901760, %v525_v47  ;;  %v4901_v54 = vsub.f32 %v541_v35, %v4871_v40  ;;  %v4906_v55 = vsub.f32 %v522_v43, %v4880_v46  ;;  %v3982_v31 = vld [vmem:[%s4863_s15 + $0x40] sm:$0xff]  ;;  %v3983_v33 = vld [vmem:[%s4863_s15 + $0x48] sm:$0xff]  ;;  %v3984_v34 = vld [vmem:[%s4863_s15 + $0x50] sm:$0xff]  ;;  %s5130_s11 = scalar_lea.vmem [#allocation3], %s4857_s13  ;;  %p3998_p0 = scmp.ne.s32.totalorder %s4674_s17, 0 }
  0x40   : > { %v4893_v51 = vsub.f32 %v516_v36, %v4873_v41  ;;  %4235 = vmatprep.mubr.f32.mxu1 %v4873_v41  ;;  %4220 = vmatpush3.msra.mxu0 %v4871_v40  ;;  %v4908_v56 = vand.u32 4294901760, %v528_v48  ;;  %v4910_v57 = vand.u32 4294901760, %v531_v49  ;;  %v534_v58 = vsel %vm514_vm1, %v512_v50, 0  ;;  %v3985_v38 = vld [vmem:[%s4863_s15 + $0x58] sm:$0xff]  ;;  %v3986_v39 = vld [vmem:[%s4863_s15 + $0x60] sm:$0xff]  ;;  %v3988_v50 = vld [vmem:[%s4863_s15 + $0x70] sm:$0xff] }
  0x41   : > { %v621_v60 = vand.u32 4294901760, %v4896_v52  ;;  %v4916_v61 = vsub.f32 %v525_v47, %v4898_v53  ;;  %v4919_v62 = vand.u32 4294901760, %v4901_v54  ;;  %4247 = vmatprep.subr.mxu0 %v4901_v54  ;;  %v631_v63 = vand.u32 4294901760, %v4906_v55 }
  0x42   : > { %v611_v59 = vand.u32 4294901760, %v4893_v51  ;;  %v4924_v0 = vsub.f32 %v528_v48, %v4908_v56  ;;  %v4927_v1 = vsub.f32 %v531_v49, %v4910_v57  ;;  %v4929_v2 = vand.u32 4294901760, %v534_v58  ;;  %v3987_v49 = vld [vmem:[%s4863_s15 + $0x68] sm:$0xff] }
  0x43   : > { %v622_v4 = vsub.f32 %v4896_v52, %v621_v60  ;;  %v641_v5 = vand.u32 4294901760, %v4916_v61  ;;  %v723_v6 = vsub.f32 %v4901_v54, %v4919_v62  ;;  %v632_v7 = vsub.f32 %v4906_v55, %v631_v63 }
  0x44   : > { %v612_v3 = vsub.f32 %v4893_v51, %v611_v59  ;;  %v651_v8 = vand.u32 4294901760, %v4924_v0  ;;  %v661_v9 = vand.u32 4294901760, %v4927_v1  ;;  %v4940_v10 = vsub.f32 %v534_v58, %v4929_v2 }
  0x45   : > { %v623_v13 = vand.u32 4294901760, %v622_v4  ;;  %v642_v14 = vsub.f32 %v4916_v61, %v641_v5  ;;  %v4944_v15 = vand.u32 4294901760, %v723_v6  ;;  %v633_v16 = vand.u32 4294901760, %v632_v7 }
  0x46   : > { %v613_v12 = vand.u32 4294901760, %v612_v3  ;;  %v652_v17 = vsub.f32 %v4924_v0, %v651_v8  ;;  %v671_v18 = vand.u32 4294901760, %v4940_v10  ;;  %v537_v19 = vsel %vm514_vm1, %v513_v11, 0 }
  0x47   : > { %4233 = vmatprep.subr.mxu1 %v4944_v15  ;;  %v643_v20 = vand.u32 4294901760, %v642_v14  ;;  %v662_v21 = vsub.f32 %v4927_v1, %v661_v9  ;;  %v4954_v22 = vand.u32 4294901760, %v537_v19  ;;  %v1300_v32 = vsel %vm514_vm1, %v3982_v31, 0  ;;  %v2070_v31 = vld [vmem:[%s5130_s11] sm:$0xff] }
  0x48   : > { %4221 = vmatprep.mubr.f32.mxu0 %v613_v12  ;;  %4234 = vmatpush3.msra.mxu1 %v4944_v15  ;;  %v653_v23 = vand.u32 4294901760, %v652_v17  ;;  %v672_v24 = vsub.f32 %v4940_v10, %v671_v18  ;;  %v4985_v35 = vand.u32 4294901760, %v1300_v32  ;;  %v1303_v36 = vsel %vm514_vm1, %v3983_v33, 0  ;;  %v505_v17 = vld [vmem:[%s491_s10] sm:$0xff] }
  0x49   : > { %4222 = vmatmul.mubr.f32.vlgmr.msra.gmra.mxu0 %v623_v13  ;;  %4236 = vmatmul.mubr.f32.vlgmr.msra.gmra.mxu1 %v4875_v42  ;;  %v680_v25 = vsub.f32 %v537_v19, %v4954_v22  ;;  %v663_v26 = vand.u32 4294901760, %v662_v21  ;;  %v1306_v37 = vsel %vm514_vm1, %v3984_v34, 0  ;;  %v4993_v43 = vand.u32 4294901760, %v1303_v36 }
  0x4a   : > { %4224 = vmatprep.mubr.f32.mxu0 %v633_v16  ;;  %4248 = vmatpush3.msra.mxu0 %v4901_v54  ;;  %v673_v28 = vand.u32 4294901760, %v672_v24  ;;  %v4995_v44 = vand.u32 4294901760, %v1306_v37  ;;  %v4999_v45 = vsub.f32 %v1300_v32, %v4985_v35  ;;  %v1309_v47 = vsel %vm514_vm1, %v3985_v38, 0  ;;  %v2072_v32 = vld [vmem:[%s5130_s11 + $0x10] sm:$0xff]  ;;  %v2074_v38 = vld [vmem:[%s5130_s11 + $0x20] sm:$0xff] }
  0x4b   : > { %4261 = vmatprep.subr.mxu1 %v4871_v40  ;;  %4238 = vmatprep.mubr.f32.mxu1 %v4880_v46  ;;  %v681_v27 = vand.u32 4294901760, %v680_v25  ;;  %v1312_v48 = vsel %vm514_vm1, %v3986_v39, 0  ;;  %v5090_v21 = vand.u32 4294901760, %v505_v17 }
  0x4c   : > { %4262 = vmatpush3.msra.mxu1 %v4871_v40  ;;  %4275 = vmatprep.subr.mxu0 %v4919_v62  ;;  %v1391_v58 = vand.u32 4294901760, %v4999_v45 }
  0x4d   : > { %4225 = vmatmul.mubr.f32.gmra.mxu0 %v643_v20  ;;  %4289 = vmatprep.subr.mxu1 %v4871_v40  ;;  %v682_v29 = vsub.f32 %v680_v25, %v681_v27 }
  0x4e   : > { %4227 = vmatprep.mubr.f32.mxu0 %v653_v23  ;;  %4239 = vmatmul.mubr.f32.gmra.mxu1 %v4898_v53  ;;  %v1392_v3 = vsub.f32 %v4999_v45, %v1391_v58 }
  0x4f   : > { %4241 = vmatprep.mubr.f32.mxu1 %v4908_v56  ;;  %v683_v30 = vand.u32 4294901760, %v682_v29 }
  0x51   : > { %4228 = vmatmul.mubr.f32.gmra.mxu0 %v663_v26 }
  0x52   : > { %4230 = vmatprep.mubr.f32.mxu0 %v673_v28  ;;  %4242 = vmatmul.mubr.f32.gmra.mxu1 %v4910_v57 }
  0x53   : > { %4244 = vmatprep.mubr.f32.mxu1 %v4929_v2 }
  0x55   : > { %4231 = vmatmul.mubr.f32.gmra.mxu0 %v683_v30 }
  0x56   : > { %4249 = vmatprep.mubr.f32.mxu0 %v4893_v51  ;;  %4245 = vmatmul.mubr.f32.gmra.mxu1 %v4954_v22  ;;  %v5008_v51 = vsub.f32 %v1303_v36, %v4993_v43  ;;  %v2086_v36 = vsel %vm2078_vm2, %v2072_v32, 0  ;;  %v3993_v32 = vld [vmem:[%s5130_s11 + $0x58] sm:$0xff] }
  0x57   : > { %4263 = vmatprep.mubr.f32.mxu1 %v611_v59  ;;  %v5018_v59 = vand.u32 4294901760, %v1312_v48 }
  0x59   : > { %4250 = vmatmul.mubr.f32.vlgmr.msra.gmra.mxu0 %v4896_v52  ;;  %v5011_v52 = vsub.f32 %v1306_v37, %v4995_v44  ;;  %v2073_v37 = vld [vmem:[%s5130_s11 + $0x18] sm:$0xff] }
  0x5a   : > { %4252 = vmatprep.mubr.f32.mxu0 %v4906_v55  ;;  %4276 = vmatpush3.msra.mxu0 %v4919_v62  ;;  %v5013_v55 = vand.u32 4294901760, %v1309_v47 }
  0x5b   : > { %4264 = vmatmul.mubr.f32.vlgmr.msra.gmra.mxu1 %v621_v60  ;;  %4303 = vmatprep.subr.mxu0 %v4871_v40  ;;  %v1318_v60 = vsel %vm514_vm1, %v3988_v50, 0  ;;  %v2075_v50 = vld [vmem:[%s5130_s11 + $0x28] sm:$0xff] }
  0x5c   : > { %4290 = vmatpush3.msra.mxu1 %v4871_v40  ;;  %4266 = vmatprep.mubr.f32.mxu1 %v631_v63  ;;  %v1401_v63 = vand.u32 4294901760, %v5008_v51  ;;  %v5043_v4 = vand.u32 4294901760, %v1318_v60 }
  0x5d   : > { %4253 = vmatmul.mubr.f32.gmra.mxu0 %v4916_v61  ;;  %4317 = vmatprep.subr.mxu1 %v4944_v15  ;;  %v3989_v61 = vld [vmem:[%s4863_s15 + $0x78] sm:$0xff] }
  0x5e   : > { %4255 = vmatprep.mubr.f32.mxu0 %v4924_v0  ;;  %v1411_v0 = vand.u32 4294901760, %v5011_v52  ;;  %v1402_v6 = vsub.f32 %v5008_v51, %v1401_v63  ;;  %v5065_v11 = vsub.f32 %v1318_v60, %v5043_v4 }
  0x5f   : > { %4267 = vmatmul.mubr.f32.gmra.mxu1 %v641_v5  ;;  %v1321_v5 = vsel %vm514_vm1, %v3989_v61, 0 }
  0x60   : > { %4269 = vmatprep.mubr.f32.mxu1 %v651_v8  ;;  %v1403_v12 = vand.u32 4294901760, %v1402_v6 }
  0x61   : > { %4256 = vmatmul.mubr.f32.gmra.mxu0 %v4927_v1  ;;  %v5031_v1 = vsub.f32 %v1309_v47, %v5013_v55 }
  0x62   : > { %4258 = vmatprep.mubr.f32.mxu0 %v4940_v10  ;;  %v1393_v10 = vand.u32 4294901760, %v1392_v3 }
  0x63   : > { %4270 = vmatmul.mubr.f32.gmra.mxu1 %v661_v9  ;;  %v1421_v7 = vand.u32 4294901760, %v5031_v1  ;;  %v5057_v9 = vand.u32 4294901760, %v1321_v5 }
  0x64   : > { %4272 = vmatprep.mubr.f32.mxu1 %v671_v18 }
  0x65   : > { %4259 = vmatmul.mubr.f32.gmra.mxu0 %v680_v25  ;;  %v1422_v13 = vsub.f32 %v5031_v1, %v1421_v7 }
  0x66   : > { %4277 = vmatprep.mubr.f32.mxu0 %v4873_v41 }
  0x67   : > { %4273 = vmatmul.mubr.f32.gmra.mxu1 %v681_v27  ;;  %v1423_v18 = vand.u32 4294901760, %v1422_v13 }
  0x68   : > { %4291 = vmatprep.mubr.f32.mxu1 %v4873_v41  ;;  %v1315_v41 = vsel %vm514_vm1, %v3987_v49, 0  ;;  %v2092_v49 = vsel %vm2078_vm2, %v2074_v38, 0 }
  0x69   : > { %4278 = vmatmul.mubr.f32.vlgmr.msra.gmra.mxu0 %v4875_v42  ;;  %v5181_v61 = vand.u32 4294901760, %v2092_v49 }
  0x6a   : > { %4280 = vmatprep.mubr.f32.mxu0 %v4880_v46  ;;  %4304 = vmatpush3.msra.mxu0 %v4871_v40 }
  0x6b   : > { %4292 = vmatmul.mubr.f32.vlgmr.msra.gmra.mxu1 %v4875_v42  ;;  %4331 = vmatprep.subr.mxu0 %v4901_v54  ;;  %v5034_v42 = vand.u32 4294901760, %v1315_v41 }
  0x6c   : > { %4318 = vmatpush3.msra.mxu1 %v4944_v15  ;;  %4294 = vmatprep.mubr.f32.mxu1 %v4880_v46  ;;  %v5041_v46 = vsub.f32 %v1312_v48, %v5018_v59  ;;  %v5078_v15 = vsub.f32 %v1321_v5, %v5057_v9  ;;  %v2089_v48 = vsel %vm2078_vm2, %v2073_v37, 0 }
  0x6d   : > { %4281 = vmatmul.mubr.f32.gmra.mxu0 %v4898_v53  ;;  %4345 = vmatprep.subr.mxu1 %v4871_v40  ;;  %v5055_v8 = vsub.f32 %v1315_v41, %v5034_v42  ;;  %v5176_v41 = vand.u32 4294901760, %v2089_v48 }
  0x6e   : > { %4283 = vmatprep.mubr.f32.mxu0 %v4908_v56  ;;  %v1461_v20 = vand.u32 4294901760, %v5078_v15 }
  0x6f   : > { %4295 = vmatmul.mubr.f32.gmra.mxu1 %v4898_v53  ;;  %v1412_v53 = vsub.f32 %v5011_v52, %v1411_v0  ;;  %v1441_v14 = vand.u32 4294901760, %v5055_v8 }
  0x70   : > { %4297 = vmatprep.mubr.f32.mxu1 %v4908_v56  ;;  %v1431_v56 = vand.u32 4294901760, %v5041_v46  ;;  %v1462_v25 = vsub.f32 %v5078_v15, %v1461_v20 }
  0x71   : > { %4284 = vmatmul.mubr.f32.gmra.mxu0 %v4910_v57  ;;  %v1442_v19 = vsub.f32 %v5055_v8, %v1441_v14 }
  0x72   : > { %4286 = vmatprep.mubr.f32.mxu0 %v4929_v2  ;;  %v1432_v16 = vsub.f32 %v5041_v46, %v1431_v56  ;;  %v1463_v27 = vand.u32 4294901760, %v1462_v25  ;;  %v3990_v25 = vld [vmem:[%s5130_s11 + $0x40] sm:$0xff] }
  0x73   : > { %4298 = vmatmul.mubr.f32.gmra.mxu1 %v4910_v57  ;;  %v1413_v57 = vand.u32 4294901760, %v1412_v53 }
  0x74   : > { %4300 = vmatprep.mubr.f32.mxu1 %v4929_v2  ;;  %v1451_v2 = vand.u32 4294901760, %v5065_v11  ;;  %v1433_v23 = vand.u32 4294901760, %v1432_v16 }
  0x75   : > { %4287 = vmatmul.mubr.f32.gmra.mxu0 %v4954_v22 }
  0x76   : > { %4305 = vmatprep.mubr.f32.mxu0 %v1393_v10  ;;  %v1452_v24 = vsub.f32 %v5065_v11, %v1451_v2 }
  0x77   : > { %4301 = vmatmul.mubr.f32.gmra.mxu1 %v4954_v22  ;;  %v1443_v22 = vand.u32 4294901760, %v1442_v19 }
  0x78   : > { %4319 = vmatprep.mubr.f32.mxu1 %v4985_v35  ;;  %v1453_v26 = vand.u32 4294901760, %v1452_v24 }
  0x79   : > { %4306 = vmatmul.mubr.f32.vlgmr.msra.gmra.mxu0 %v1403_v12 }
  0x7a   : > { %4308 = vmatprep.mubr.f32.mxu0 %v1413_v57  ;;  %4332 = vmatpush3.msra.mxu0 %v4901_v54  ;;  %v5103_v54 = vsub.f32 %v505_v17, %v5090_v21 }
  0x7b   : > { %4320 = vmatmul.mubr.f32.vlgmr.msra.gmra.mxu1 %v4993_v43  ;;  %4359 = vmatprep.subr.mxu0 %v4919_v62 }
  0x7c   : > { %4346 = vmatpush3.msra.mxu1 %v4871_v40  ;;  %4322 = vmatprep.mubr.f32.mxu1 %v4995_v44  ;;  %v5108_v28 = vand.u32 4294901760, %v5103_v54 }
  0x7d   : > { %4309 = vmatmul.mubr.f32.gmra.mxu0 %v1423_v18  ;;  %4373 = vmatprep.subr.mxu1 %v4871_v40 }
  0x7e   : > { %4311 = vmatprep.mubr.f32.mxu0 %v1433_v23  ;;  %v2283_v29 = vsub.f32 %v5103_v54, %v5108_v28 }
  0x7f   : > { %4323 = vmatmul.mubr.f32.gmra.mxu1 %v5013_v55 }
  0x80   : > { %4325 = vmatprep.mubr.f32.mxu1 %v5018_v59  ;;  %v5119_v30 = vand.u32 4294901760, %v2283_v29  ;;  %v3992_v29 = vld [vmem:[%s5130_s11 + $0x50] sm:$0xff] }
  0x81   : > { %4312 = vmatmul.mubr.f32.gmra.mxu0 %v1443_v22 }
  0x82   : > { %4314 = vmatprep.mubr.f32.mxu0 %v1453_v26  ;;  %v2860_v26 = vsel %vm2078_vm2, %v3990_v25, 0 }
  0x83   : > { %4326 = vmatmul.mubr.f32.gmra.mxu1 %v5034_v42 }
  0x84   : > { %4328 = vmatprep.mubr.f32.mxu1 %v5043_v4 }
  0x85   : > { %4315 = vmatmul.mubr.f32.gmra.mxu0 %v1463_v27  ;;  %v3991_v27 = vld [vmem:[%s5130_s11 + $0x48] sm:$0xff] }
  0x86   : > { %4333 = vmatprep.mubr.f32.mxu0 %v4999_v45  ;;  %v5156_v45 = vand.u32 4294901760, %v2086_v36 }
  0x87   : > { %4329 = vmatmul.mubr.f32.gmra.mxu1 %v5057_v9 }
  0x88   : > { %4347 = vmatprep.mubr.f32.mxu1 %v1391_v58  ;;  %v5174_v58 = vsub.f32 %v2086_v36, %v5156_v45 }
  0x89   : > { %4334 = vmatmul.mubr.f32.vlgmr.msra.gmra.mxu0 %v5008_v51  ;;  %v2076_v51 = vld [vmem:[%s5130_s11 + $0x30] sm:$0xff] }
  0x8a   : > { %4336 = vmatprep.mubr.f32.mxu0 %v5011_v52  ;;  %4360 = vmatpush3.msra.mxu0 %v4919_v62  ;;  %v2071_v62 = vld [vmem:[%s5130_s11 + $0x8] sm:$0xff]  ;;  %v2191_v3 = vand.u32 4294901760, %v5174_v58 }
  0x8b   : > { %4348 = vmatmul.mubr.f32.vlgmr.msra.gmra.mxu1 %v1401_v63  ;;  %4387 = vmatprep.subr.mxu0 %v5090_v21  ;;  %v2083_v34 = vsel %vm2078_vm2, %v2071_v62, 0  ;;  %v2098_v63 = vsel %vm2078_vm2, %v2076_v51, 0  ;;  %v2866_v62 = vsel %vm2078_vm2, %v3992_v29, 0 }
  0x8c   : > { %4374 = vmatpush3.msra.mxu1 %v4871_v40  ;;  %4350 = vmatprep.mubr.f32.mxu1 %v1411_v0  ;;  %v2080_v40 = vsel %vm2078_vm2, %v2070_v31, 0  ;;  %v5154_v39 = vand.u32 4294901760, %v2083_v34  ;;  %v2077_v0 = vld [vmem:[%s5130_s11 + $0x38] sm:$0xff]  ;;  %v5206_v6 = vand.u32 4294901760, %v2098_v63  ;;  %v5277_v31 = vand.u32 4294901760, %v2860_v26 }
  0x8d   : > { %4337 = vmatmul.mubr.f32.gmra.mxu0 %v5031_v1  ;;  %4401 = vmatprep.subr.mxu1 %v5119_v30  ;;  %v5145_v33 = vand.u32 4294901760, %v2080_v40  ;;  %v5286_v37 = vand.u32 4294901760, %v2866_v62 }
  0x8e   : > { %4339 = vmatprep.mubr.f32.mxu0 %v5041_v46  ;;  %v5171_v52 = vsub.f32 %v2083_v34, %v5154_v39  ;;  %v5194_v46 = vsub.f32 %v2089_v48, %v5176_v41  ;;  %v5227_v12 = vsub.f32 %v2098_v63, %v5206_v6  ;;  %v3994_v34 = vld [vmem:[%s5130_s11 + $0x60] sm:$0xff]  ;;  %v5290_v38 = vsub.f32 %v2860_v26, %v5277_v31 }
  0x8f   : > { %4351 = vmatmul.mubr.f32.gmra.mxu1 %v1421_v7  ;;  %v5160_v47 = vsub.f32 %v2080_v40, %v5145_v33  ;;  %v2101_v7 = vsel %vm2078_vm2, %v2077_v0, 0  ;;  %v2863_v40 = vsel %vm2078_vm2, %v3991_v27, 0  ;;  %v2872_v48 = vsel %vm2078_vm2, %v3994_v34, 0  ;;  %v3997_v0 = vld [vmem:[%s5130_s11 + $0x78] sm:$0xff] }
  0x90   : > { %4353 = vmatprep.mubr.f32.mxu1 %v1431_v56  ;;  %v2181_v1 = vand.u32 4294901760, %v5171_v52  ;;  %v2201_v10 = vand.u32 4294901760, %v5194_v46  ;;  %v5219_v56 = vand.u32 4294901760, %v2101_v7  ;;  %v2231_v17 = vand.u32 4294901760, %v5227_v12 }
  0x91   : > { %4340 = vmatmul.mubr.f32.gmra.mxu0 %v5055_v8  ;;  %v2171_v60 = vand.u32 4294901760, %v5160_v47  ;;  %v5284_v36 = vand.u32 4294901760, %v2863_v40 }
  0x92   : > { %4342 = vmatprep.mubr.f32.mxu0 %v5065_v11  ;;  %v2182_v8 = vsub.f32 %v5171_v52, %v2181_v1  ;;  %v5235_v57 = vsub.f32 %v2101_v7, %v5219_v56 }
  0x93   : > { %4354 = vmatmul.mubr.f32.gmra.mxu1 %v1441_v14  ;;  %v2172_v5 = vsub.f32 %v5160_v47, %v2171_v60  ;;  %v2202_v14 = vsub.f32 %v5194_v46, %v2201_v10  ;;  %v5299_v51 = vsub.f32 %v2863_v40, %v5284_v36 }
  0x94   : > { %4356 = vmatprep.mubr.f32.mxu1 %v1451_v2  ;;  %v2183_v13 = vand.u32 4294901760, %v2182_v8  ;;  %v2241_v18 = vand.u32 4294901760, %v5235_v57 }
  0x95   : > { %4343 = vmatmul.mubr.f32.gmra.mxu0 %v5078_v15  ;;  %v2173_v11 = vand.u32 4294901760, %v2172_v5 }
  0x96   : > { %4361 = vmatprep.mubr.f32.mxu0 %v4985_v35  ;;  %v2242_v23 = vsub.f32 %v5235_v57, %v2241_v18 }
  0x97   : > { %4357 = vmatmul.mubr.f32.gmra.mxu1 %v1461_v20  ;;  %v2232_v20 = vsub.f32 %v5227_v12, %v2231_v17 }
  0x98   : > { %4375 = vmatprep.mubr.f32.mxu1 %v4985_v35  ;;  %v2095_v35 = vsel %vm2078_vm2, %v2075_v50, 0  ;;  %v2243_v22 = vand.u32 4294901760, %v2242_v23  ;;  %v3996_v50 = vld [vmem:[%s5130_s11 + $0x70] sm:$0xff] }
  0x99   : > { %4362 = vmatmul.mubr.f32.vlgmr.msra.gmra.mxu0 %v4993_v43  ;;  %v2233_v24 = vand.u32 4294901760, %v2232_v20  ;;  %v2878_v63 = vsel %vm2078_vm2, %v3996_v50, 0 }
  0x9a   : > { %4364 = vmatprep.mubr.f32.mxu0 %v4995_v44  ;;  %4388 = vmatpush3.msra.mxu0 %v5090_v21  ;;  %v5334_v5 = vand.u32 4294901760, %v2878_v63 }
  0x9b   : > { %4376 = vmatmul.mubr.f32.vlgmr.msra.gmra.mxu1 %v4993_v43  ;;  %4415 = vmatprep.subr.mxu0 %v5103_v54  ;;  %v5197_v43 = vand.u32 4294901760, %v2095_v35 }
  0x9c   : > { %4402 = vmatpush3.msra.mxu1 %v5119_v30  ;;  %4378 = vmatprep.mubr.f32.mxu1 %v4995_v44  ;;  %v5204_v44 = vsub.f32 %v2092_v49, %v5181_v61  ;;  %v3995_v49 = vld [vmem:[%s5130_s11 + $0x68] sm:$0xff] }
  0x9d   : > { %4365 = vmatmul.mubr.f32.gmra.mxu0 %v5013_v55  ;;  %4429 = vmatprep.subr.mxu1 %v5090_v21  ;;  %v5217_v53 = vsub.f32 %v2095_v35, %v5197_v43  ;;  %v5309_v35 = vand.u32 4294901760, %v2872_v48 }
  0x9e   : > { %4367 = vmatprep.mubr.f32.mxu0 %v5018_v59 }
  0x9f   : > { %4379 = vmatmul.mubr.f32.gmra.mxu1 %v5013_v55  ;;  %v2192_v55 = vsub.f32 %v5174_v58, %v2191_v3  ;;  %v2221_v15 = vand.u32 4294901760, %v5217_v53 }
  0xa0   : > { %4381 = vmatprep.mubr.f32.mxu1 %v5018_v59  ;;  %v2211_v59 = vand.u32 4294901760, %v5204_v44 }
  0xa1   : > { %4368 = vmatmul.mubr.f32.gmra.mxu0 %v5034_v42  ;;  %v2193_v16 = vand.u32 4294901760, %v2192_v55  ;;  %v3010_v55 = vsub.f32 %v2878_v63, %v5334_v5 }
  0xa2   : > { %4370 = vmatprep.mubr.f32.mxu0 %v5043_v4  ;;  %v2212_v2 = vsub.f32 %v5204_v44, %v2211_v59 }
  0xa3   : > { %4382 = vmatmul.mubr.f32.gmra.mxu1 %v5034_v42  ;;  %v2203_v42 = vand.u32 4294901760, %v2202_v14 }
  0xa4   : > { %4384 = vmatprep.mubr.f32.mxu1 %v5043_v4  ;;  %v2222_v4 = vsub.f32 %v5217_v53, %v2221_v15  ;;  %v2213_v19 = vand.u32 4294901760, %v2212_v2 }
  0xa5   : > { %4371 = vmatmul.mubr.f32.gmra.mxu0 %v5057_v9 }
  0xa6   : > { %4389 = vmatprep.mubr.f32.mxu0 %v2173_v11 }
  0xa7   : > { %4385 = vmatmul.mubr.f32.gmra.mxu1 %v5057_v9  ;;  %v2223_v9 = vand.u32 4294901760, %v2222_v4 }
  0xa8   : > { %4403 = vmatprep.mubr.f32.mxu1 %v5145_v33 }
  0xa9   : > { %4390 = vmatmul.mubr.f32.vlgmr.msra.gmra.mxu0 %v2183_v13 }
  0xaa   : > { %4392 = vmatprep.mubr.f32.mxu0 %v2193_v16  ;;  %4416 = vmatpush3.msra.mxu0 %v5103_v54  ;;  %v3011_v16 = vand.u32 4294901760, %v3010_v55 }
  0xab   : > { %4404 = vmatmul.mubr.f32.vlgmr.msra.gmra.mxu1 %v5154_v39  ;;  %4443 = vmatprep.subr.mxu0 %v5108_v28 }
  0xac   : > { %4430 = vmatpush3.msra.mxu1 %v5090_v21  ;;  %4406 = vmatprep.mubr.f32.mxu1 %v5156_v45 }
  0xad   : > { %4393 = vmatmul.mubr.f32.gmra.mxu0 %v2203_v42  ;;  %4457 = vmatprep.subr.mxu1 %v5090_v21  ;;  %v3012_v42 = vsub.f32 %v3010_v55, %v3011_v16 }
  0xae   : > { %4395 = vmatprep.mubr.f32.mxu0 %v2213_v19 }
  0xaf   : > { %4407 = vmatmul.mubr.f32.gmra.mxu1 %v5176_v41 }
  0xb0   : > { %4409 = vmatprep.mubr.f32.mxu1 %v5181_v61 }
  0xb1   : > { %4396 = vmatmul.mubr.f32.gmra.mxu0 %v2223_v9 }
  0xb2   : > { %4398 = vmatprep.mubr.f32.mxu0 %v2233_v24 }
  0xb3   : > { %4410 = vmatmul.mubr.f32.gmra.mxu1 %v5197_v43 }
  0xb4   : > { %4412 = vmatprep.mubr.f32.mxu1 %v5206_v6 }
  0xb5   : > { %4399 = vmatmul.mubr.f32.gmra.mxu0 %v2243_v22 }
  0xb6   : > { %4417 = vmatprep.mubr.f32.mxu0 %v5160_v47  ;;  %v2869_v47 = vsel %vm2078_vm2, %v3993_v32, 0 }
  0xb7   : > { %4413 = vmatmul.mubr.f32.gmra.mxu1 %v5219_v56 }
  0xb8   : > { %4431 = vmatprep.mubr.f32.mxu1 %v2171_v60  ;;  %v2951_v60 = vand.u32 4294901760, %v5290_v38 }
  0xb9   : > { %4418 = vmatmul.mubr.f32.vlgmr.msra.gmra.mxu0 %v5171_v52  ;;  %v5302_v52 = vsub.f32 %v2866_v62, %v5286_v37 }
  0xba   : > { %4420 = vmatprep.mubr.f32.mxu0 %v5174_v58  ;;  %4444 = vmatpush3.msra.mxu0 %v5108_v28  ;;  %v5304_v58 = vand.u32 4294901760, %v2869_v47 }
  0xbb   : > { %4432 = vmatmul.mubr.f32.vlgmr.msra.gmra.mxu1 %v2181_v1  ;;  %4471 = vmatprep.subr.mxu0 %v5090_v21  ;;  %v2961_v1 = vand.u32 4294901760, %v5299_v51 }
  0xbc   : > { %4458 = vmatpush3.msra.mxu1 %v5090_v21  ;;  %4434 = vmatprep.mubr.f32.mxu1 %v2191_v3  ;;  %v2971_v3 = vand.u32 4294901760, %v5302_v52 }
  0xbd   : > { %4421 = vmatmul.mubr.f32.gmra.mxu0 %v5194_v46  ;;  %4485 = vmatprep.subr.mxu1 %v5119_v30  ;;  %v5322_v46 = vsub.f32 %v2869_v47, %v5304_v58  ;;  %v2962_v7 = vsub.f32 %v5299_v51, %v2961_v1 }
  0xbe   : > { %4423 = vmatprep.mubr.f32.mxu0 %v5204_v44  ;;  %v2881_v44 = vsel %vm2078_vm2, %v3997_v0, 0 }
  0xbf   : > { %4435 = vmatmul.mubr.f32.gmra.mxu1 %v2201_v10  ;;  %v2981_v8 = vand.u32 4294901760, %v5322_v46 }
  0xc0   : > { %4437 = vmatprep.mubr.f32.mxu1 %v2211_v59  ;;  %v2963_v59 = vand.u32 4294901760, %v2962_v7 }
  0xc1   : > { %4424 = vmatmul.mubr.f32.gmra.mxu0 %v5217_v53  ;;  %v5345_v53 = vand.u32 4294901760, %v2881_v44 }
  0xc2   : > { %4426 = vmatprep.mubr.f32.mxu0 %v5227_v12  ;;  %v2982_v12 = vsub.f32 %v5322_v46, %v2981_v8 }
  0xc3   : > { %4438 = vmatmul.mubr.f32.gmra.mxu1 %v2221_v15  ;;  %v3020_v14 = vsub.f32 %v2881_v44, %v5345_v53 }
  0xc4   : > { %4440 = vmatprep.mubr.f32.mxu1 %v2231_v17 }
  0xc5   : > { %4427 = vmatmul.mubr.f32.gmra.mxu0 %v5235_v57  ;;  %v3021_v2 = vand.u32 4294901760, %v3020_v14 }
  0xc6   : > { %4445 = vmatprep.mubr.f32.mxu0 %v5145_v33 }
  0xc7   : > { %4441 = vmatmul.mubr.f32.gmra.mxu1 %v2241_v18  ;;  %v3022_v4 = vsub.f32 %v3020_v14, %v3021_v2  ;;  %v3013_v18 = vand.u32 4294901760, %v3012_v42 }
  0xc8   : > { %4459 = vmatprep.mubr.f32.mxu1 %v5145_v33  ;;  %v2875_v33 = vsel %vm2078_vm2, %v3995_v49, 0 }
  0xc9   : > { %4446 = vmatmul.mubr.f32.vlgmr.msra.gmra.mxu0 %v5154_v39 }
  0xca   : > { %4448 = vmatprep.mubr.f32.mxu0 %v5156_v45  ;;  %4472 = vmatpush3.msra.mxu0 %v5090_v21 }
  0xcb   : > { %4460 = vmatmul.mubr.f32.vlgmr.msra.gmra.mxu1 %v5154_v39  ;;  %4499 = vmatprep.subr.mxu0 %v5103_v54  ;;  %v5325_v39 = vand.u32 4294901760, %v2875_v33 }
  0xcc   : > { %4486 = vmatpush3.msra.mxu1 %v5119_v30  ;;  %4462 = vmatprep.mubr.f32.mxu1 %v5156_v45  ;;  %v2952_v30 = vsub.f32 %v5290_v38, %v2951_v60  ;;  %v5332_v45 = vsub.f32 %v2872_v48, %v5309_v35 }
  0xcd   : > { %4449 = vmatmul.mubr.f32.gmra.mxu0 %v5176_v41  ;;  %4513 = vmatprep.subr.mxu1 %v5090_v21  ;;  %v3000_v10 = vsub.f32 %v2875_v33, %v5325_v39 }
  0xce   : > { %4451 = vmatprep.mubr.f32.mxu0 %v5181_v61  ;;  %v2953_v11 = vand.u32 4294901760, %v2952_v30 }
  0xcf   : > { %4463 = vmatmul.mubr.f32.gmra.mxu1 %v5176_v41  ;;  %v2972_v41 = vsub.f32 %v5302_v52, %v2971_v3  ;;  %v3001_v13 = vand.u32 4294901760, %v3000_v10 }
  0xd0   : > { %4465 = vmatprep.mubr.f32.mxu1 %v5181_v61  ;;  %v2991_v61 = vand.u32 4294901760, %v5332_v45 }
  0xd1   : > { %4452 = vmatmul.mubr.f32.gmra.mxu0 %v5197_v43  ;;  %v2973_v15 = vand.u32 4294901760, %v2972_v41 }
  0xd2   : > { %4454 = vmatprep.mubr.f32.mxu0 %v5206_v6  ;;  %v2992_v57 = vsub.f32 %v5332_v45, %v2991_v61 }
  0xd3   : > { %4466 = vmatmul.mubr.f32.gmra.mxu1 %v5197_v43  ;;  %v2983_v43 = vand.u32 4294901760, %v2982_v12 }
  0xd4   : > { %4468 = vmatprep.mubr.f32.mxu1 %v5206_v6  ;;  %v3002_v6 = vsub.f32 %v3000_v10, %v3001_v13  ;;  %v2993_v17 = vand.u32 4294901760, %v2992_v57 }
  0xd5   : > { %4455 = vmatmul.mubr.f32.gmra.mxu0 %v5219_v56 }
  0xd6   : > { %4473 = vmatprep.mubr.f32.mxu0 %v2953_v11 }
  0xd7   : > { %4469 = vmatmul.mubr.f32.gmra.mxu1 %v5219_v56  ;;  %v3003_v56 = vand.u32 4294901760, %v3002_v6 }
  0xd8   : > { %4487 = vmatprep.mubr.f32.mxu1 %v5277_v31 }
  0xd9   : > { %4474 = vmatmul.mubr.f32.vlgmr.msra.gmra.mxu0 %v2963_v59 }
  0xda   : > { %4476 = vmatprep.mubr.f32.mxu0 %v2973_v15  ;;  %4500 = vmatpush3.msra.mxu0 %v5103_v54  ;;  %v3023_v54 = vand.u32 4294901760, %v3022_v4 }
  0xdb   : > { %4488 = vmatmul.mubr.f32.vlgmr.msra.gmra.mxu1 %v5284_v36  ;;  %4527 = vmatprep.subr.mxu0 %v5108_v28 }
  0xdc   : > { %4514 = vmatpush3.msra.mxu1 %v5090_v21  ;;  %4490 = vmatprep.mubr.f32.mxu1 %v5286_v37 }
  0xdd   : > { %4477 = vmatmul.mubr.f32.gmra.mxu0 %v2983_v43  ;;  %4541 = vmatprep.subr.mxu1 %v5090_v21 }
  0xde   : > { %4479 = vmatprep.mubr.f32.mxu0 %v2993_v17 }
  0xdf   : > { %4491 = vmatmul.mubr.f32.gmra.mxu1 %v5304_v58 }
  0xe0   : > { %4493 = vmatprep.mubr.f32.mxu1 %v5309_v35 }
  0xe1   : > { %4480 = vmatmul.mubr.f32.gmra.mxu0 %v3003_v56 }
  0xe2   : > { %4482 = vmatprep.mubr.f32.mxu0 %v3013_v18 }
  0xe3   : > { %4494 = vmatmul.mubr.f32.gmra.mxu1 %v5325_v39 }
  0xe4   : > { %4496 = vmatprep.mubr.f32.mxu1 %v5334_v5 }
  0xe5   : > { %4483 = vmatmul.mubr.f32.gmra.mxu0 %v3023_v54 }
  0xe6   : > { %4501 = vmatprep.mubr.f32.mxu0 %v5290_v38 }
  0xe7   : > { %4497 = vmatmul.mubr.f32.gmra.mxu1 %v5345_v53 }
  0xe8   : > { %4515 = vmatprep.mubr.f32.mxu1 %v2951_v60 }
  0xe9   : > { %4502 = vmatmul.mubr.f32.vlgmr.msra.gmra.mxu0 %v5299_v51 }
  0xea   : > { %4504 = vmatprep.mubr.f32.mxu0 %v5302_v52  ;;  %4528 = vmatpush3.msra.mxu0 %v5108_v28 }
  0xeb   : > { %4516 = vmatmul.mubr.f32.vlgmr.msra.gmra.mxu1 %v2961_v1 }
  0xec   : > { %4542 = vmatpush3.msra.mxu1 %v5090_v21  ;;  %4518 = vmatprep.mubr.f32.mxu1 %v2971_v3 }
  0xed   : > { %4505 = vmatmul.mubr.f32.gmra.mxu0 %v5322_v46 }
  0xee   : > { %4507 = vmatprep.mubr.f32.mxu0 %v5332_v45 }
  0xef   : > { %4519 = vmatmul.mubr.f32.gmra.mxu1 %v2981_v8 }
  0xf0   : > { %4521 = vmatprep.mubr.f32.mxu1 %v2991_v61 }
  0xf1   : > { %4508 = vmatmul.mubr.f32.gmra.mxu0 %v3000_v10 }
  0xf2   : > { %4510 = vmatprep.mubr.f32.mxu0 %v3010_v55 }
  0xf3   : > { %4522 = vmatmul.mubr.f32.gmra.mxu1 %v3001_v13 }
  0xf4   : > { %4524 = vmatprep.mubr.f32.mxu1 %v3011_v16 }
  0xf5   : > { %4511 = vmatmul.mubr.f32.gmra.mxu0 %v3020_v14 }
  0xf6   : > { %4529 = vmatprep.mubr.f32.mxu0 %v5277_v31 }
  0xf7   : > { %4525 = vmatmul.mubr.f32.gmra.mxu1 %v3021_v2 }
  0xf8   : > { %4543 = vmatprep.mubr.f32.mxu1 %v5277_v31 }
  0xf9   : > { %4530 = vmatmul.mubr.f32.vlgmr.msra.gmra.mxu0 %v5284_v36 }
  0xfa   : > { %4532 = vmatprep.mubr.f32.mxu0 %v5286_v37 }
  0xfb   : > { %4544 = vmatmul.mubr.f32.vlgmr.msra.gmra.mxu1 %v5284_v36 }
  0xfc   : > { %4546 = vmatprep.mubr.f32.mxu1 %v5286_v37 }
  0xfd   : > { %4533 = vmatmul.mubr.f32.gmra.mxu0 %v5304_v58 }
  0xfe   : > { %4535 = vmatprep.mubr.f32.mxu0 %v5309_v35 }
  0xff   : > { %4547 = vmatmul.mubr.f32.gmra.mxu1 %v5304_v58 }
 0x100   : > { %4549 = vmatprep.mubr.f32.mxu1 %v5309_v35 }
 0x101   : > { %4536 = vmatmul.mubr.f32.gmra.mxu0 %v5325_v39 }
 0x102   : > { %4538 = vmatprep.mubr.f32.mxu0 %v5334_v5 }
 0x103   : > { %4550 = vmatmul.mubr.f32.gmra.mxu1 %v5325_v39 }
 0x104   : > { %4552 = vmatprep.mubr.f32.mxu1 %v5334_v5 }
 0x105   : > { %4539 = vmatmul.mubr.f32.gmra.mxu0 %v5345_v53 }
 0x107   : > { %4553 = vmatmul.mubr.f32.gmra.mxu1 %v5345_v53 }
 0x109   : > { %v4223_v21 = vpop.f32.mrf.mxu0  ;;  %v4237_v19 = vpop.f32.mrf.mxu1 }
 0x10a   : > { %v768_v20 = vadd.f32 %v4237_v19, %v4223_v21 }
 0x10b   : > { %v615_v28 = vpop.f32.mrf.mxu0  ;;  %v761_v23 = vpop.f32.mrf.mxu1 }
 0x10c   : > { %v762_v24 = vadd.f32 %v761_v23, %v615_v28 }
 0x10d   : > { %v4226_v9 = vpop.f32.mrf.mxu0 }
 0x10e   : > { %v4240_v25 = vpop.f32.mrf.mxu1 }
 0x10f   : > { %v635_v22 = vpop.f32.mrf.mxu0  ;;  %v780_v26 = vadd.f32 %v4240_v25, %v4226_v9 }
 0x110   : > { %v773_v29 = vpop.f32.mrf.mxu1 }
 0x111   : > { %v4229_v27 = vpop.f32.mrf.mxu0  ;;  %v774_v31 = vadd.f32 %v773_v29, %v635_v22 }
 0x112   : > { %v4243_v62 = vpop.f32.mrf.mxu1 }
 0x113   : > { %v655_v40 = vpop.f32.mrf.mxu0  ;;  %v792_v32 = vadd.f32 %v4243_v62, %v4229_v27 }
 0x114   : > { %v785_v36 = vpop.f32.mrf.mxu1 }
 0x115   : > { %v4232_v34 = vpop.f32.mrf.mxu0  ;;  %v786_v37 = vadd.f32 %v785_v36, %v655_v40 }
 0x116   : > { %v4246_v47 = vpop.f32.mrf.mxu1 }
 0x117   : > { %v675_v38 = vpop.f32.mrf.mxu0  ;;  %v804_v48 = vadd.f32 %v4246_v47, %v4232_v34 }
 0x118   : > { %v797_v50 = vpop.f32.mrf.mxu1 }
 0x119   : > { %v4251_v49 = vpop.f32.mrf.mxu0  ;;  %v798_v52 = vadd.f32 %v797_v50, %v675_v38 }
 0x11a   : > { %v885_v51 = vadd.f32 %v4251_v49, %v768_v20 }
 0x11b   : > { %v877_v58 = vpop.f32.mrf.mxu0  ;;  %v4265_v60 = vpop.f32.mrf.mxu1 }
 0x11c   : > { %v878_v35 = vadd.f32 %v877_v58, %v762_v24  ;;  %v1009_v33 = vadd.f32 %v4265_v60, %v885_v51 }
 0x11d   : > { %v4254_v63 = vpop.f32.mrf.mxu0  ;;  %v1000_v0 = vpop.f32.mrf.mxu1 }
 0x11e   : > { %v899_v1 = vadd.f32 %v4254_v63, %v780_v26  ;;  %v1001_v3 = vadd.f32 %v1000_v0, %v878_v35 }
 0x11f   : > { %v891_v46 = vpop.f32.mrf.mxu0  ;;  %v4268_v39 = vpop.f32.mrf.mxu1 }
 0x120   : > { %v892_v30 = vadd.f32 %v891_v46, %v774_v31  ;;  %v1025_v45 = vadd.f32 %v4268_v39, %v899_v1 }
 0x121   : > { %v4257_v5 = vpop.f32.mrf.mxu0  ;;  %v1016_v44 = vpop.f32.mrf.mxu1 }
 0x122   : > { %v913_v7 = vadd.f32 %v4257_v5, %v792_v32  ;;  %v1017_v8 = vadd.f32 %v1016_v44, %v892_v30 }
 0x123   : > { %v905_v10 = vpop.f32.mrf.mxu0  ;;  %v4271_v53 = vpop.f32.mrf.mxu1 }
 0x124   : > { %v906_v11 = vadd.f32 %v905_v10, %v786_v37  ;;  %v1041_v41 = vadd.f32 %v4271_v53, %v913_v7 }
 0x125   : > { %v4260_v61 = vpop.f32.mrf.mxu0  ;;  %v1032_v55 = vpop.f32.mrf.mxu1 }
 0x126   : > { %v927_v59 = vadd.f32 %v4260_v61, %v804_v48  ;;  %v1033_v12 = vadd.f32 %v1032_v55, %v906_v11 }
 0x127   : > { %v919_v13 = vpop.f32.mrf.mxu0  ;;  %v4274_v14 = vpop.f32.mrf.mxu1 }
 0x128   : > { %v920_v15 = vadd.f32 %v919_v13, %v798_v52  ;;  %v1057_v57 = vadd.f32 %v4274_v14, %v927_v59 }
 0x129   : > { %v4279_v16 = vpop.f32.mrf.mxu0  ;;  %v1048_v43 = vpop.f32.mrf.mxu1 }
 0x12a   : > { %v1137_v6 = vadd.f32 %v4279_v16, %v1009_v33  ;;  %v1049_v2 = vadd.f32 %v1048_v43, %v920_v15 }
 0x12b   : > { %v1130_v17 = vpop.f32.mrf.mxu0  ;;  %v4293_v42 = vpop.f32.mrf.mxu1 }
 0x12c   : > { %v1131_v56 = vadd.f32 %v1130_v17, %v1001_v3  ;;  %v5401_v4 = vadd.f32 %v4293_v42, %v1137_v6 }
 0x12d   : > { %v4282_v18 = vpop.f32.mrf.mxu0  ;;  %v1244_v54 = vpop.f32.mrf.mxu1 }
 0x12e   : > { %v1149_v21 = vadd.f32 %v4282_v18, %v1025_v45  ;;  %v5403_v28 = vadd.f32 %v1244_v54, %v1131_v56 }
 0x12f   : > { %v1142_v19 = vpop.f32.mrf.mxu0  ;;  %v4296_v20 = vpop.f32.mrf.mxu1 }
 0x130   : > { %v1143_v9 = vadd.f32 %v1142_v19, %v1017_v8  ;;  %v5405_v23 = vadd.f32 %v4296_v20, %v1149_v21 }
 0x131   : > { %v4285_v24 = vpop.f32.mrf.mxu0  ;;  %v1256_v22 = vpop.f32.mrf.mxu1 }
 0x132   : > { %v1161_v25 = vadd.f32 %v4285_v24, %v1041_v41  ;;  %v5407_v26 = vadd.f32 %v1256_v22, %v1143_v9 }
 0x133   : > { %v1154_v27 = vpop.f32.mrf.mxu0  ;;  %v4299_v29 = vpop.f32.mrf.mxu1 }
 0x134   : > { %v1155_v31 = vadd.f32 %v1154_v27, %v1033_v12  ;;  %v5409_v40 = vadd.f32 %v4299_v29, %v1161_v25 }
 0x135   : > { %v4288_v62 = vpop.f32.mrf.mxu0  ;;  %v1268_v32 = vpop.f32.mrf.mxu1 }
 0x136   : > { %5767 = vst [vmem:[#allocation4_spill] sm:$0xff] %v5409_v40  ;;  %v1173_v34 = vadd.f32 %v4288_v62, %v1057_v57  ;;  %v5411_v36 = vadd.f32 %v1268_v32, %v1155_v31 }
 0x137   : > { %v1166_v37 = vpop.f32.mrf.mxu0  ;;  %v4302_v38 = vpop.f32.mrf.mxu1 }
 0x138   : > { %5768 = vst [vmem:[#allocation5_spill] sm:$0xff] %v5411_v36  ;;  %v1167_v47 = vadd.f32 %v1166_v37, %v1049_v2  ;;  %v5413_v48 = vadd.f32 %v4302_v38, %v1173_v34 }
 0x139   : > { %v4307_v49 = vpop.f32.mrf.mxu0  ;;  %v1280_v50 = vpop.f32.mrf.mxu1 }
 0x13a   : > { %5769 = vst [vmem:[#allocation6_spill] sm:$0xff] %v5413_v48  ;;  %v5415_v51 = vadd.f32 %v1280_v50, %v1167_v47 }
 0x13b   : > { %v1395_v52 = vpop.f32.mrf.mxu0  ;;  %v4321_v58 = vpop.f32.mrf.mxu1 }
 0x13c   : > { %5770 = vst [vmem:[#allocation7_spill] sm:$0xff] %v5415_v51  ;;  %v5417_v60 = vadd.f32 %v4321_v58, %v4307_v49 }
 0x13d   : > { %v4310_v35 = vpop.f32.mrf.mxu0  ;;  %v1541_v33 = vpop.f32.mrf.mxu1 }
 0x13e   : > { %v1542_v63 = vadd.f32 %v1541_v33, %v1395_v52 }
 0x13f   : > { %v1415_v0 = vpop.f32.mrf.mxu0  ;;  %v4324_v1 = vpop.f32.mrf.mxu1 }
 0x140   : > { %v1560_v3 = vadd.f32 %v4324_v1, %v4310_v35 }
 0x141   : > { %v4313_v46 = vpop.f32.mrf.mxu0  ;;  %v1553_v39 = vpop.f32.mrf.mxu1 }
 0x142   : > { %v1554_v30 = vadd.f32 %v1553_v39, %v1415_v0 }
 0x143   : > { %v1435_v45 = vpop.f32.mrf.mxu0  ;;  %v4327_v5 = vpop.f32.mrf.mxu1 }
 0x144   : > { %v1572_v44 = vadd.f32 %v4327_v5, %v4313_v46 }
 0x145   : > { %v4316_v7 = vpop.f32.mrf.mxu0  ;;  %v1565_v8 = vpop.f32.mrf.mxu1 }
 0x146   : > { %v1566_v10 = vadd.f32 %v1565_v8, %v1435_v45 }
 0x147   : > { %v1455_v53 = vpop.f32.mrf.mxu0  ;;  %v4330_v11 = vpop.f32.mrf.mxu1 }
 0x148   : > { %v1584_v41 = vadd.f32 %v4330_v11, %v4316_v7 }
 0x149   : > { %v5419_v61 = vpop.f32.mrf.mxu0  ;;  %v1577_v55 = vpop.f32.mrf.mxu1 }
 0x14a   : > { %v1578_v59 = vadd.f32 %v1577_v55, %v1455_v53 }
 0x14b   : > { %v1657_v12 = vpop.f32.mrf.mxu0  ;;  %v5421_v13 = vpop.f32.mrf.mxu1 }
 0x14c   : > { %v1658_v14 = vadd.f32 %v1657_v12, %v1542_v63 }
 0x14d   : > { %v4338_v15 = vpop.f32.mrf.mxu0  ;;  %v1780_v57 = vpop.f32.mrf.mxu1 }
 0x14e   : > { %v1679_v16 = vadd.f32 %v4338_v15, %v1560_v3  ;;  %v5423_v43 = vadd.f32 %v1780_v57, %v1658_v14 }
 0x14f   : > { %v1671_v6 = vpop.f32.mrf.mxu0  ;;  %v4352_v2 = vpop.f32.mrf.mxu1 }
 0x150   : > { %v1672_v17 = vadd.f32 %v1671_v6, %v1554_v30  ;;  %v5425_v42 = vadd.f32 %v4352_v2, %v1679_v16 }
 0x151   : > { %v4341_v56 = vpop.f32.mrf.mxu0  ;;  %v1796_v18 = vpop.f32.mrf.mxu1 }
 0x152   : > { %v1693_v54 = vadd.f32 %v4341_v56, %v1572_v44  ;;  %v5427_v21 = vadd.f32 %v1796_v18, %v1672_v17 }
 0x153   : > { %v1685_v19 = vpop.f32.mrf.mxu0  ;;  %v4355_v20 = vpop.f32.mrf.mxu1 }
 0x154   : > { %v1686_v9 = vadd.f32 %v1685_v19, %v1566_v10  ;;  %v5429_v24 = vadd.f32 %v4355_v20, %v1693_v54 }
 0x155   : > { %v4344_v22 = vpop.f32.mrf.mxu0  ;;  %v1812_v25 = vpop.f32.mrf.mxu1 }
 0x156   : > { %v1707_v27 = vadd.f32 %v4344_v22, %v1584_v41  ;;  %v5431_v29 = vadd.f32 %v1812_v25, %v1686_v9 }
 0x157   : > { %v1699_v31 = vpop.f32.mrf.mxu0  ;;  %v4358_v62 = vpop.f32.mrf.mxu1 }
 0x158   : > { %v1700_v32 = vadd.f32 %v1699_v31, %v1578_v59  ;;  %v1837_v34 = vadd.f32 %v4358_v62, %v1707_v27 }
 0x159   : > { %v5433_v37 = vpop.f32.mrf.mxu0  ;;  %v1828_v38 = vpop.f32.mrf.mxu1 }
 0x15a   : > { %v1829_v47 = vadd.f32 %v1828_v38, %v1700_v32 }
 0x15b   : > { %v5435_v49 = vpop.f32.mrf.mxu0  ;;  %v5437_v50 = vpop.f32.mrf.mxu1 }
 0x15d   : > { %v5439_v52 = vpop.f32.mrf.mxu0  ;;  %v5441_v58 = vpop.f32.mrf.mxu1 }
 0x15f   : > { %v5443_v35 = vpop.f32.mrf.mxu0  ;;  %v5445_v33 = vpop.f32.mrf.mxu1 }
 0x161   : > { %v5447_v63 = vpop.f32.mrf.mxu0  ;;  %v5449_v0 = vpop.f32.mrf.mxu1 }
 0x163   : > { %v5451_v1 = vpop.f32.mrf.mxu0  ;;  %v5453_v3 = vpop.f32.mrf.mxu1 }
 0x164   : > { %5771 = vst [vmem:[#allocation8_spill] sm:$0xff] %v5451_v1  ;;  %5772 = vst [vmem:[#allocation9_spill] sm:$0xff] %v5453_v3 }
 0x165   : > { %v4372_v46 = vpop.f32.mrf.mxu0  ;;  %v5455_v39 = vpop.f32.mrf.mxu1 }
 0x166   : > { %5773 = vst [vmem:[#allocation10_spill] sm:$0xff] %v5455_v39  ;;  %v1953_v30 = vadd.f32 %v4372_v46, %v1837_v34 }
 0x167   : > { %v1946_v45 = vpop.f32.mrf.mxu0  ;;  %v4386_v5 = vpop.f32.mrf.mxu1 }
 0x168   : > { %v1947_v44 = vadd.f32 %v1946_v45, %v1829_v47  ;;  %v5457_v7 = vadd.f32 %v4386_v5, %v1953_v30  ;;  %v1665_v45 = vadd.f32 %v5419_v61, %v5417_v60 }
 0x169   : > { %v4391_v8 = vpop.f32.mrf.mxu0  ;;  %v2060_v10 = vpop.f32.mrf.mxu1 }
 0x16a   : > { %5774 = vst [vmem:[#allocation11_spill] sm:$0xff] %v5457_v7  ;;  %v5459_v53 = vadd.f32 %v2060_v10, %v1947_v44  ;;  %v1789_v7 = vadd.f32 %v5421_v13, %v1665_v45 }
 0x16b   : > { %v2175_v11 = vpop.f32.mrf.mxu0  ;;  %v4405_v41 = vpop.f32.mrf.mxu1 }
 0x16c   : > { %5775 = vst [vmem:[#allocation12_spill] sm:$0xff] %v5459_v53  ;;  %v2328_v47 = vadd.f32 %v4405_v41, %v4391_v8  ;;  %v1917_v8 = vadd.f32 %v5433_v37, %v1789_v7 }
 0x16d   : > { %v4394_v55 = vpop.f32.mrf.mxu0  ;;  %v2321_v59 = vpop.f32.mrf.mxu1 }
 0x16e   : > { %v2322_v5 = vadd.f32 %v2321_v59, %v2175_v11  ;;  %v5482_v11 = vadd.f32 %v5437_v50, %v1917_v8  ;;  %v1911_v50 = vadd.f32 %v5435_v49, %v5423_v43 }
 0x16f   : > { %v2195_v12 = vpop.f32.mrf.mxu0  ;;  %v4408_v14 = vpop.f32.mrf.mxu1 }
 0x170   : > { %v2340_v51 = vadd.f32 %v4408_v14, %v4394_v55 }
 0x171   : > { %v4397_v15 = vpop.f32.mrf.mxu0  ;;  %v2333_v57 = vpop.f32.mrf.mxu1 }
 0x172   : > { %v2334_v13 = vadd.f32 %v2333_v57, %v2195_v12 }
 0x173   : > { %v2215_v16 = vpop.f32.mrf.mxu0  ;;  %v4411_v6 = vpop.f32.mrf.mxu1 }
 0x175   : > { %v5461_v2 = vpop.f32.mrf.mxu0  ;;  %v2345_v17 = vpop.f32.mrf.mxu1 }
 0x176   : > { %v2346_v57 = vadd.f32 %v2345_v17, %v2215_v16 }
 0x177   : > { %v5463_v56 = vpop.f32.mrf.mxu0  ;;  %v5465_v18 = vpop.f32.mrf.mxu1 }
 0x179   : > { %v4419_v54 = vpop.f32.mrf.mxu0  ;;  %v5467_v19 = vpop.f32.mrf.mxu1 }
 0x17a   : > { %v2445_v44 = vadd.f32 %v4419_v54, %v2328_v47 }
 0x17b   : > { %v2437_v20 = vpop.f32.mrf.mxu0  ;;  %v4433_v9 = vpop.f32.mrf.mxu1 }
 0x17c   : > { %v2438_v48 = vadd.f32 %v2437_v20, %v2322_v5  ;;  %v2569_v39 = vadd.f32 %v4433_v9, %v2445_v44 }
 0x17d   : > { %v4422_v22 = vpop.f32.mrf.mxu0  ;;  %v2560_v25 = vpop.f32.mrf.mxu1 }
 0x17e   : > { %v2459_v41 = vadd.f32 %v4422_v22, %v2340_v51  ;;  %v2561_v40 = vadd.f32 %v2560_v25, %v2438_v48 }
 0x17f   : > { %v2451_v27 = vpop.f32.mrf.mxu0  ;;  %v4436_v31 = vpop.f32.mrf.mxu1 }
 0x180   : > { %v2585_v59 = vadd.f32 %v4436_v31, %v2459_v41 }
 0x181   : > { %v4425_v62 = vpop.f32.mrf.mxu0  ;;  %v2576_v32 = vpop.f32.mrf.mxu1 }
 0x183   : > { %v2465_v34 = vpop.f32.mrf.mxu0  ;;  %v4439_v38 = vpop.f32.mrf.mxu1 }
 0x184   : > { %v2466_v49 = vadd.f32 %v2465_v34, %v2346_v57 }
 0x185   : > { %v5469_v46 = vpop.f32.mrf.mxu0  ;;  %v2592_v30 = vpop.f32.mrf.mxu1 }
 0x186   : > { %v2593_v17 = vadd.f32 %v2592_v30, %v2466_v49 }
 0x187   : > { %v5473_v10 = vpop.f32.mrf.mxu0  ;;  %v5475_v53 = vpop.f32.mrf.mxu1 }
 0x189   : > { %v4447_v3 = vpop.f32.mrf.mxu0  ;;  %v5478_v36 = vpop.f32.mrf.mxu1 }
 0x18a   : > { %v2697_v1 = vadd.f32 %v4447_v3, %v2569_v39  ;;  %v2452_v3 = vadd.f32 %v2451_v27, %v2334_v13  ;;  %v5493_v27 = vadd.f32 %v5441_v58, %v1911_v50 }
 0x18b   : > { %v2690_v60 = vpop.f32.mrf.mxu0  ;;  %v4461_v61 = vpop.f32.mrf.mxu1 }
 0x18c   : > { %v2691_v54 = vadd.f32 %v2690_v60, %v2561_v40  ;;  %v2811_v47 = vadd.f32 %v4461_v61, %v2697_v1  ;;  %v1929_v40 = vadd.f32 %v5439_v52, %v5425_v42  ;;  %v2352_v1 = vadd.f32 %v4411_v6, %v4397_v15 }
 0x18d   : > { %v4450_v55 = vpop.f32.mrf.mxu0  ;;  %v2804_v14 = vpop.f32.mrf.mxu1  ;;  %v2577_v22 = vadd.f32 %v2576_v32, %v2452_v3  ;;  %v1923_v52 = vadd.f32 %v5443_v35, %v5427_v21  ;;  %v2364_v21 = vadd.f32 %v5465_v18, %v5461_v2  ;;  %v2358_v35 = vadd.f32 %v5467_v19, %v5463_v56  ;;  %v5776_v56 = vld [vmem:[#allocation8_spill] sm:$0xff]  ;;  %v5778_v3 = vld [vmem:[#allocation5_spill] sm:$0xff] }
 0x18e   : > { %v2709_v20 = vadd.f32 %v4450_v55, %v2585_v59  ;;  %v2805_v9 = vadd.f32 %v2804_v14, %v2691_v54  ;;  %v3703_v45 = vmul.f32 %v2811_v47, %v5482_v11  ;;  %v3631_v37 = vmul.f32 %v2811_v47, %v5401_v4 }
 0x18f   : > { %v2702_v51 = vpop.f32.mrf.mxu0  ;;  %v4464_v48 = vpop.f32.mrf.mxu1  ;;  %v2473_v5 = vadd.f32 %v4425_v62, %v2352_v1  ;;  %v5496_v43 = vadd.f32 %v5445_v33, %v1929_v40  ;;  %v5503_v33 = vadd.f32 %v5449_v0, %v1923_v52  ;;  %v2487_v14 = vadd.f32 %v5469_v46, %v2364_v21  ;;  %v5780_v1 = vld [vmem:[#allocation10_spill] sm:$0xff] }
 0x190   : > { %v2823_v39 = vadd.f32 %v4464_v48, %v2709_v20  ;;  %3712 = vadd.xlane.f32.xlu1 %v3703_v45  ;;  %3640 = vadd.xlane.f32.xlu0 %v3631_v37  ;;  %v3630_v31 = vmul.f32 %v2805_v9, %v5403_v28  ;;  %v2703_v42 = vadd.f32 %v2702_v51, %v2577_v22  ;;  %v5777_v51 = vld [vmem:[#allocation4_spill] sm:$0xff] }
 0x191   : > { %v4453_v7 = vpop.f32.mrf.mxu0  ;;  %v2816_v12 = vpop.f32.mrf.mxu1  ;;  %v2601_v15 = vadd.f32 %v4439_v38, %v2473_v5  ;;  %v3702_v62 = vmul.f32 %v2805_v9, %v5493_v27  ;;  %v2480_v20 = vadd.f32 %v5473_v10, %v2358_v35  ;;  %v1941_v2 = vadd.f32 %v5447_v63, %v5429_v24 }
 0x192   : > { %v3633_v25 = vmul.f32 %v2823_v39, %v5405_v23  ;;  %v2817_v32 = vadd.f32 %v2816_v12, %v2703_v42  ;;  %v3705_v58 = vmul.f32 %v2823_v39, %v5496_v43  ;;  %v1935_v18 = vadd.f32 %v5776_v56, %v5431_v29  ;;  %v5779_v39 = vld [vmem:[#allocation9_spill] sm:$0xff]  ;;  %v5782_v42 = vld [vmem:[#allocation7_spill] sm:$0xff] }
 0x193   : > { %v2714_v44 = vpop.f32.mrf.mxu0  ;;  %v4467_v8 = vpop.f32.mrf.mxu1  ;;  %v2721_v34 = vadd.f32 %v4453_v7, %v2601_v15  ;;  %v2617_v45 = vadd.f32 %v5475_v53, %v2487_v14  ;;  %v2609_v37 = vadd.f32 %v5478_v36, %v2480_v20  ;;  %v5522_v10 = vadd.f32 %v5779_v39, %v1941_v2 }
 0x194   : > { %3644 = vadd.xlane.f32.xlu1 %v3633_v25  ;;  %3638 = vadd.xlane.f32.xlu0 %v3630_v31  ;;  %v2715_v61 = vadd.f32 %v2714_v44, %v2593_v17  ;;  %v3632_v47 = vmul.f32 %v2817_v32, %v5407_v26  ;;  %v3704_v13 = vmul.f32 %v2817_v32, %v5503_v33 }
 0x195   : > { %v4456_v16 = vpop.f32.mrf.mxu0  ;;  %v2828_v6 = vpop.f32.mrf.mxu1  ;;  %v2835_v59 = vadd.f32 %v4467_v8, %v2721_v34  ;;  %v5525_v24 = vadd.f32 %v5780_v1, %v1935_v18  ;;  %v5781_v8 = vld [vmem:[#allocation6_spill] sm:$0xff] }
 0x196   : > { %v2829_v54 = vadd.f32 %v2828_v6, %v2715_v61  ;;  %v2733_v63 = vadd.f32 %v4456_v16, %v2617_v45 }
 0x197   : > { %v2726_v41 = vpop.f32.mrf.mxu0  ;;  %v4470_v60 = vpop.f32.mrf.mxu1  ;;  %v3635_v48 = vmul.f32 %v2835_v59, %v5777_v51  ;;  %v3707_v57 = vmul.f32 %v2835_v59, %v5522_v10 }
 0x198   : > { %3716 = vadd.xlane.f32.xlu1 %v3705_v58  ;;  %3710 = vadd.xlane.f32.xlu0 %v3702_v62  ;;  %v3634_v46 = vmul.f32 %v2829_v54, %v5778_v3  ;;  %v2727_v29 = vadd.f32 %v2726_v41, %v2609_v37  ;;  %v5529_v36 = vadd.f32 %v4470_v60, %v2733_v63 }
 0x199   : > { %v4475_v38 = vpop.f32.mrf.mxu0  ;;  %v2840_v30 = vpop.f32.mrf.mxu1  ;;  %v3706_v22 = vmul.f32 %v2829_v54, %v5525_v24 }
 0x19a   : > { %v5531_v12 = vadd.f32 %v2840_v30, %v2727_v29  ;;  %v3637_v49 = vmul.f32 %v5529_v36, %v5781_v8 }
 0x19b   : > { %v2955_v0 = vpop.f32.mrf.mxu0  ;;  %v4489_v55 = vpop.f32.mrf.mxu1 }
 0x19c   : > { %3642 = vadd.xlane.f32.xlu1 %v3632_v47  ;;  %3714 = vadd.xlane.f32.xlu0 %v3704_v13  ;;  %v3636_v52 = vmul.f32 %v5531_v12, %v5782_v42  ;;  %v3108_v59 = vadd.f32 %v4489_v55, %v4475_v38 }
 0x19d   : > { %v4478_v19 = vpop.f32.mrf.mxu0  ;;  %v3101_v9 = vpop.f32.mrf.mxu1 }
 0x19e   : > { %v3102_v13 = vadd.f32 %v3101_v9, %v2955_v0 }
 0x19f   : > { %v2975_v50 = vpop.f32.mrf.mxu0  ;;  %v4492_v40 = vpop.f32.mrf.mxu1 }
 0x1a0   : > { %3648 = vadd.xlane.f32.xlu1 %v3635_v48  ;;  %3646 = vadd.xlane.f32.xlu0 %v3634_v46  ;;  %v3120_v48 = vadd.f32 %v4492_v40, %v4478_v19 }
 0x1a1   : > { %v5527_v7 = vpop.f32.mrf.mxu0  ;;  %v3113_v53 = vpop.f32.mrf.mxu1 }
 0x1a2   : > { %v3114_v29 = vadd.f32 %v3113_v53, %v2975_v50 }
 0x1a3   : > { %v5535_v25 = vpop.f32.mrf.mxu0  ;;  %v4495_v31 = vpop.f32.mrf.mxu1 }
 0x1a4   : > { %3720 = vadd.xlane.f32.xlu1 %v3707_v57  ;;  %3718 = vadd.xlane.f32.xlu0 %v3706_v22  ;;  %v3132_v50 = vadd.f32 %v4495_v31, %v5527_v7 }
 0x1a5   : > { %v5537_v5 = vpop.f32.mrf.mxu0  ;;  %v3125_v44 = vpop.f32.mrf.mxu1 }
 0x1a7   : > { %v5543_v15 = vpop.f32.mrf.mxu0  ;;  %v5545_v16 = vpop.f32.mrf.mxu1 }
 0x1a8   : > { %3652 = vadd.xlane.f32.xlu1 %v3637_v49  ;;  %3650 = vadd.xlane.f32.xlu0 %v3636_v52 }
 0x1a9   : > { %v4503_v6 = vpop.f32.mrf.mxu0  ;;  %v5547_v17 = vpop.f32.mrf.mxu1 }
 0x1aa   : > { %v3225_v14 = vadd.f32 %v4503_v6, %v3108_v59 }
 0x1ab   : > { %v3217_v32 = vpop.f32.mrf.mxu0  ;;  %v4517_v58 = vpop.f32.mrf.mxu1 }
 0x1ac   : > { %v3218_v56 = vadd.f32 %v3217_v32, %v3102_v13  ;;  %v3349_v18 = vadd.f32 %v4517_v58, %v3225_v14 }
 0x1ad   : > { %v4506_v62 = vpop.f32.mrf.mxu0  ;;  %v3340_v41 = vpop.f32.mrf.mxu1 }
 0x1ae   : > { %v3341_v46 = vadd.f32 %v3340_v41, %v3218_v56  ;;  %v3239_v57 = vadd.f32 %v4506_v62, %v3120_v48 }
 0x1af   : > { %v3231_v60 = vpop.f32.mrf.mxu0  ;;  %v4520_v34 = vpop.f32.mrf.mxu1 }
 0x1b0   : > { %v3232_v52 = vadd.f32 %v3231_v60, %v3114_v29  ;;  %v3365_v0 = vadd.f32 %v4520_v34, %v3239_v57  ;;  %v3126_v34 = vadd.f32 %v3125_v44, %v5535_v25  ;;  %v3144_v25 = vadd.f32 %v5545_v16, %v5537_v5 }
 0x1b1   : > { %v4509_v61 = vpop.f32.mrf.mxu0  ;;  %v3356_v21 = vpop.f32.mrf.mxu1 }
 0x1b2   : > { %v3357_v59 = vadd.f32 %v3356_v21, %v3232_v52  ;;  %v3253_v14 = vadd.f32 %v4509_v61, %v3132_v50 }
 0x1b3   : > { %v3245_v35 = vpop.f32.mrf.mxu0  ;;  %v4523_v30 = vpop.f32.mrf.mxu1 }
 0x1b5   : > { %v4512_v54 = vpop.f32.mrf.mxu0  ;;  %v3372_v47 = vpop.f32.mrf.mxu1 }
 0x1b7   : > { %v3259_v20 = vpop.f32.mrf.mxu0  ;;  %v4526_v2 = vpop.f32.mrf.mxu1 }
 0x1b9   : > { %v4531_v45 = vpop.f32.mrf.mxu0  ;;  %v3388_v37 = vpop.f32.mrf.mxu1 }
 0x1ba   : > { %v3477_v39 = vadd.f32 %v4531_v45, %v3349_v18  ;;  %v3246_v18 = vadd.f32 %v3245_v35, %v3126_v34  ;;  %v3381_v45 = vadd.f32 %v4523_v30, %v3253_v14  ;;  %v3138_v30 = vadd.f32 %v5547_v17, %v5543_v15 }
 0x1bb   : > { %v3470_v1 = vpop.f32.mrf.mxu0  ;;  %v4545_v63 = vpop.f32.mrf.mxu1 }
 0x1bc   : > { %v3471_v22 = vadd.f32 %v3470_v1, %v3341_v46  ;;  %v3591_v49 = vadd.f32 %v4545_v63, %v3477_v39  ;;  %v3373_v31 = vadd.f32 %v3372_v47, %v3246_v18 }
 0x1bd   : > { %v4534_v38 = vpop.f32.mrf.mxu0  ;;  %v3584_v55 = vpop.f32.mrf.mxu1 }
 0x1be   : > { %v3585_v9 = vadd.f32 %v3584_v55, %v3471_v22  ;;  %v3655_v6 = vmul.f32 %v3591_v49, %v5482_v11  ;;  %v3489_v13 = vadd.f32 %v4534_v38, %v3365_v0  ;;  %v3679_v41 = vmul.f32 %v3591_v49, %v5401_v4 }
 0x1bf   : > { %v3482_v32 = vpop.f32.mrf.mxu0  ;;  %v4548_v58 = vpop.f32.mrf.mxu1 }
 0x1c0   : > { %3664 = vadd.xlane.f32.xlu1 %v3655_v6  ;;  %v3654_v19 = vmul.f32 %v3585_v9, %v5493_v27  ;;  %v3483_v53 = vadd.f32 %v3482_v32, %v3357_v59  ;;  %v3603_v62 = vadd.f32 %v4548_v58, %v3489_v13  ;;  %v3678_v21 = vmul.f32 %v3585_v9, %v5403_v28 }
 0x1c1   : > { %v3596_v40 = vpop.f32.mrf.mxu1  ;;  %v4537_v60 = vpop.f32.mrf.mxu0 }
 0x1c2   : > { %3662 = vadd.xlane.f32.xlu0 %v3654_v19  ;;  %v3597_v11 = vadd.f32 %v3596_v40, %v3483_v53  ;;  %v3657_v27 = vmul.f32 %v3603_v62, %v5496_v43  ;;  %v3501_v48 = vadd.f32 %v4537_v60, %v3381_v45  ;;  %v3681_v28 = vmul.f32 %v3603_v62, %v5405_v23 }
 0x1c3   : > { %v4551_v56 = vpop.f32.mrf.mxu1  ;;  %v3494_v7 = vpop.f32.mrf.mxu0  ;;  %v3267_v43 = vadd.f32 %v4512_v54, %v3144_v25 }
 0x1c4   : > { %3688 = vadd.xlane.f32.xlu1 %v3679_v41  ;;  %v3656_v4 = vmul.f32 %v3597_v11, %v5503_v33  ;;  %v3495_v44 = vadd.f32 %v3494_v7, %v3373_v31  ;;  %v3615_v61 = vadd.f32 %v4551_v56, %v3501_v48  ;;  %v3680_v47 = vmul.f32 %v3597_v11, %v5407_v26 }
 0x1c5   : > { %v3608_v46 = vpop.f32.mrf.mxu1  ;;  %v4540_v35 = vpop.f32.mrf.mxu0  ;;  %v3260_v33 = vadd.f32 %v3259_v20, %v3138_v30  ;;  %v3397_v63 = vadd.f32 %v4526_v2, %v3267_v43  ;;  %v5783_v20 = vld [vmem:[#allocation11_spill] sm:$0xff] }
 0x1c6   : > { %3686 = vadd.xlane.f32.xlu0 %v3678_v21  ;;  %v3609_v39 = vadd.f32 %v3608_v46, %v3495_v44  ;;  %v3659_v5 = vmul.f32 %v3615_v61, %v5522_v10  ;;  %v3683_v17 = vmul.f32 %v3615_v61, %v5777_v51  ;;  %v5784_v10 = vld [vmem:[#allocation12_spill] sm:$0xff]  ;;  %v3709_v51 = vmul.f32 %v5529_v36, %v5783_v20 }
 0x1c7   : > { %v4554_v1 = vpop.f32.mrf.mxu1  ;;  %v3506_v16 = vpop.f32.mrf.mxu0  ;;  %v3389_v29 = vadd.f32 %v3388_v37, %v3260_v33  ;;  %v3513_v57 = vadd.f32 %v4540_v35, %v3397_v63 }
 0x1c8   : > { %3668 = vadd.xlane.f32.xlu1 %v3657_v27  ;;  %v3658_v23 = vmul.f32 %v3609_v39, %v5525_v24  ;;  %v3682_v26 = vmul.f32 %v3609_v39, %v5778_v3  ;;  %v3708_v3 = vmul.f32 %v5531_v12, %v5784_v10 }
 0x1c9   : > { %v3620_v22 = vpop.f32.mrf.mxu1  ;;  %v3507_v49 = vadd.f32 %v3506_v16, %v3389_v29  ;;  %v3627_v15 = vadd.f32 %v4554_v1, %v3513_v57 }
 0x1ca   : > { %3666 = vadd.xlane.f32.xlu0 %v3656_v4 }
 0x1cb   : > { %v3621_v54 = vadd.f32 %v3620_v22, %v3507_v49  ;;  %v3661_v2 = vmul.f32 %v3627_v15, %v5783_v20  ;;  %v3685_v38 = vmul.f32 %v3627_v15, %v5781_v8 }
 0x1cc   : > { %3692 = vadd.xlane.f32.xlu1 %v3681_v28 }
 0x1cd   : > { %v3660_v37 = vmul.f32 %v3621_v54, %v5784_v10  ;;  %v3684_v24 = vmul.f32 %v3621_v54, %v5782_v42 }
 0x1ce   : > { %3690 = vadd.xlane.f32.xlu0 %v3680_v47 }
 0x1d0   : > { %3672 = vadd.xlane.f32.xlu1 %v3659_v5 }
 0x1d2   : > { %3670 = vadd.xlane.f32.xlu0 %v3658_v23 }
 0x1d4   : > { %3696 = vadd.xlane.f32.xlu1 %v3683_v17 }
 0x1d6   : > { %3694 = vadd.xlane.f32.xlu0 %v3682_v26 }
 0x1d8   : > { %3676 = vadd.xlane.f32.xlu1 %v3661_v2 }
 0x1da   : > { %3674 = vadd.xlane.f32.xlu0 %v3660_v37 }
 0x1dc   : > { %3700 = vadd.xlane.f32.xlu1 %v3685_v38 }
 0x1de   : > { %3698 = vadd.xlane.f32.xlu0 %v3684_v24 }
 0x1e0   : > { %3724 = vadd.xlane.f32.xlu1 %v3709_v51 }
 0x1e2   : > { %3722 = vadd.xlane.f32.xlu0 %v3708_v3 }
 0x219   : > { %v5575_v55 = vpop.xlane.xlu1 %3712  ;;  %v5577_v52 = vpop.xlane.xlu0 %3640 }
 0x21d   : > { %v5579_v0 = vpop.xlane.xlu1 %3644  ;;  %v5581_v9 = vpop.xlane.xlu0 %3638 }
 0x221   : > { %v5583_v8 = vpop.xlane.xlu1 %3716  ;;  %v5585_v42 = vpop.xlane.xlu0 %3710 }
 0x225   : > { %v5587_v6 = vpop.xlane.xlu1 %3642  ;;  %v5589_v36 = vpop.xlane.xlu0 %3714 }
 0x229   : > { %v5591_v32 = vpop.xlane.xlu1 %3648  ;;  %v5593_v12 = vpop.xlane.xlu0 %3646 }
 0x22d   : > { %v5595_v58 = vpop.xlane.xlu1 %3720  ;;  %v5597_v59 = vpop.xlane.xlu0 %3718 }
 0x231   : > { %v5599_v13 = vpop.xlane.xlu1 %3652  ;;  %v5601_v19 = vpop.xlane.xlu0 %3650 }
 0x249   : > { %v3665_v40 = vpop.xlane.xlu1 %3664 }
 0x24b   : > { %v3663_v50 = vpop.xlane.xlu0 %3662 }
 0x24d   : > { %v5603_v53 = vpop.xlane.xlu1 %3688 }
 0x24f   : > { %v5605_v62 = vpop.xlane.xlu0 %3686 }
 0x251   : > { %v3669_v41 = vpop.xlane.xlu1 %3668 }
 0x253   : > { %v3667_v60 = vpop.xlane.xlu0 %3666 }
 0x255   : > { %v5607_v34 = vpop.xlane.xlu1 %3692 }
 0x257   : > { %v5609_v14 = vpop.xlane.xlu0 %3690 }
 0x259   : > { %v3673_v11 = vpop.xlane.xlu1 %3672 }
 0x25b   : > { %v3671_v21 = vpop.xlane.xlu0 %3670 }
 0x25d   : > { %v5611_v56 = vpop.xlane.xlu1 %3696 }
 0x25f   : > { %v5613_v18 = vpop.xlane.xlu0 %3694 }
 0x261   : > { %v3677_v45 = vpop.xlane.xlu1 %3676 }
 0x263   : > { %v3675_v27 = vpop.xlane.xlu0 %3674 }
 0x265   : > { %v5615_v7 = vpop.xlane.xlu1 %3700 }
 0x267   : > { %v5617_v31 = vpop.xlane.xlu0 %3698  ;;  %3729 = sbr.rel (%p3998_p0) target bundleno = 629 (0x275), region = 116 }
 0x269   : > { %v5619_v48 = vpop.xlane.xlu1 %3724 }
 0x26b   : > { %v5621_v4 = vpop.xlane.xlu0 %3722 }
 0x26c   : > { %vm3730_vm3 = vcmask 7168   ;;  %v4700_v46 = vmov 0.0  }
 0x26d   : > { %3731 = vst.msk [vmem:[%s4889_s6] sm:$0xff] %vm3730_vm3, %v4700_v46  ;;  %3732 = vst.msk [vmem:[%s4889_s6 + $0x8] sm:$0xff] %vm3730_vm3, %v4700_v46 }
 0x26e   : > { %3733 = vst.msk [vmem:[%s4889_s6 + $0x10] sm:$0xff] %vm3730_vm3, %v4700_v46  ;;  %3734 = vst.msk [vmem:[%s4889_s6 + $0x18] sm:$0xff] %vm3730_vm3, %v4700_v46 }
 0x26f   : > { %3735 = vst.msk [vmem:[%s4889_s6 + $0x20] sm:$0xff] %vm3730_vm3, %v4700_v46  ;;  %3736 = vst.msk [vmem:[%s4889_s6 + $0x28] sm:$0xff] %vm3730_vm3, %v4700_v46 }
 0x270   : > { %3737 = vst.msk [vmem:[%s4889_s6 + $0x30] sm:$0xff] %vm3730_vm3, %v4700_v46  ;;  %3738 = vst.msk [vmem:[%s4889_s6 + $0x38] sm:$0xff] %vm3730_vm3, %v4700_v46 }
 0x271   : > { %3739 = vst.msk [vmem:[%s4889_s6 + $0x40] sm:$0xff] %vm3730_vm3, %v4700_v46  ;;  %3740 = vst.msk [vmem:[%s4889_s6 + $0x48] sm:$0xff] %vm3730_vm3, %v4700_v46 }
 0x272   : > { %3741 = vst.msk [vmem:[%s4889_s6 + $0x50] sm:$0xff] %vm3730_vm3, %v4700_v46  ;;  %3742 = vst.msk [vmem:[%s4889_s6 + $0x58] sm:$0xff] %vm3730_vm3, %v4700_v46 }
 0x273   : > { %3743 = vst.msk [vmem:[%s4889_s6 + $0x60] sm:$0xff] %vm3730_vm3, %v4700_v46  ;;  %3744 = vst.msk [vmem:[%s4889_s6 + $0x68] sm:$0xff] %vm3730_vm3, %v4700_v46 }
 0x274   : > { %3745 = vst.msk [vmem:[%s4889_s6 + $0x70] sm:$0xff] %vm3730_vm3, %v4700_v46  ;;  %3746 = vst.msk [vmem:[%s4889_s6 + $0x78] sm:$0xff] %vm3730_vm3, %v4700_v46 }
 0x275 PF: > { %v3747_v25 = vld [vmem:[%s4889_s6] sm:$0xff]  ;;  %v3755_v44 = vsub.f32 %v5581_v9, %v3663_v50  ;;  %vm3771_vm4 = vcmask 7168   ;;  %v3748_v61 = vld [vmem:[%s4889_s6 + $0x8] sm:$0xff]  ;;  %v3756_v28 = vsub.f32 %v5577_v52, %v3665_v40  ;;  %v3749_v35 = vld [vmem:[%s4889_s6 + $0x10] sm:$0xff]  ;;  %v3757_v30 = vsub.f32 %v5587_v6, %v3667_v60 }
 0x276   : > { %v3750_v43 = vld [vmem:[%s4889_s6 + $0x18] sm:$0xff]  ;;  %v3758_v39 = vsub.f32 %v5579_v0, %v3669_v41  ;;  %v3751_v47 = vld [vmem:[%s4889_s6 + $0x20] sm:$0xff]  ;;  %v3759_v1 = vsub.f32 %v5593_v12, %v3671_v21  ;;  %v3752_v33 = vld [vmem:[%s4889_s6 + $0x28] sm:$0xff]  ;;  %v3760_v63 = vsub.f32 %v5591_v32, %v3673_v11  ;;  %v3761_v5 = vsub.f32 %v5601_v19, %v3675_v27 }
 0x277   : > { %v3763_v16 = vadd.f32 %v3755_v44, %v3747_v25  ;;  %v3764_v29 = vadd.f32 %v3756_v28, %v3748_v61  ;;  %v3765_v57 = vadd.f32 %v3757_v30, %v3749_v35  ;;  %v3753_v23 = vld [vmem:[%s4889_s6 + $0x30] sm:$0xff]  ;;  %v3754_v22 = vld [vmem:[%s4889_s6 + $0x38] sm:$0xff]  ;;  %v3762_v49 = vsub.f32 %v5599_v13, %v3677_v45 }
 0x278   : > { %v3780_v15 = vld [vmem:[%s4889_s6 + $0x40] sm:$0xff]  ;;  %v3766_v17 = vadd.f32 %v3758_v39, %v3750_v43  ;;  %v3767_v54 = vadd.f32 %v3759_v1, %v3751_v47  ;;  %v3768_v26 = vadd.f32 %v3760_v63, %v3752_v33  ;;  %v3769_v20 = vadd.f32 %v3761_v5, %v3753_v23  ;;  %v3781_v2 = vld [vmem:[%s4889_s6 + $0x48] sm:$0xff] }
 0x279   : > { %v3782_v10 = vld [vmem:[%s4889_s6 + $0x50] sm:$0xff]  ;;  %v3783_v37 = vld [vmem:[%s4889_s6 + $0x58] sm:$0xff]  ;;  %3772 = vst.msk [vmem:[%s4889_s6] sm:$0xff] %vm3771_vm4, %v3763_v16  ;;  %3773 = vst.msk [vmem:[%s4889_s6 + $0x8] sm:$0xff] %vm3771_vm4, %v3764_v29  ;;  %v3770_v38 = vadd.f32 %v3762_v49, %v3754_v22  ;;  %v3788_v24 = vadd.f32 %v5585_v42, %v5605_v62  ;;  %v3789_v51 = vadd.f32 %v5575_v55, %v5603_v53 }
 0x27a   : > { %3774 = vst.msk [vmem:[%s4889_s6 + $0x10] sm:$0xff] %vm3771_vm4, %v3765_v57  ;;  %v3790_v3 = vadd.f32 %v5589_v36, %v5609_v14  ;;  %v3784_v52 = vld [vmem:[%s4889_s6 + $0x60] sm:$0xff]  ;;  %v3785_v0 = vld [vmem:[%s4889_s6 + $0x68] sm:$0xff]  ;;  %3775 = vst.msk [vmem:[%s4889_s6 + $0x18] sm:$0xff] %vm3771_vm4, %v3766_v17  ;;  %v3791_v42 = vadd.f32 %v5583_v8, %v5607_v34  ;;  %v3792_v55 = vadd.f32 %v5597_v59, %v5613_v18 }
 0x27b   : > { %v3786_v9 = vld [vmem:[%s4889_s6 + $0x70] sm:$0xff]  ;;  %3776 = vst.msk [vmem:[%s4889_s6 + $0x20] sm:$0xff] %vm3771_vm4, %v3767_v54  ;;  %3777 = vst.msk [vmem:[%s4889_s6 + $0x28] sm:$0xff] %vm3771_vm4, %v3768_v26  ;;  %v3793_v6 = vadd.f32 %v5595_v58, %v5611_v56  ;;  %v3794_v36 = vadd.f32 %v5621_v4, %v5617_v31  ;;  %v3787_v32 = vld [vmem:[%s4889_s6 + $0x78] sm:$0xff]  ;;  %v3796_v12 = vadd.f32 %v3788_v24, %v3780_v15 }
 0x27c   : > { %3778 = vst.msk [vmem:[%s4889_s6 + $0x30] sm:$0xff] %vm3771_vm4, %v3769_v20  ;;  %3779 = vst.msk [vmem:[%s4889_s6 + $0x38] sm:$0xff] %vm3771_vm4, %v3770_v38  ;;  %v3797_v8 = vadd.f32 %v3789_v51, %v3781_v2  ;;  %v3798_v13 = vadd.f32 %v3790_v3, %v3782_v10  ;;  %v3795_v59 = vadd.f32 %v5619_v48, %v5615_v7 }
 0x27d   : > { %v3799_v19 = vadd.f32 %v3791_v42, %v3783_v37  ;;  %v3800_v40 = vadd.f32 %v3792_v55, %v3784_v52  ;;  %v3801_v58 = vadd.f32 %v3793_v6, %v3785_v0  ;;  %v3802_v50 = vadd.f32 %v3794_v36, %v3786_v9  ;;  %3804 = vst.msk [vmem:[%s4889_s6 + $0x40] sm:$0xff] %vm3771_vm4, %v3796_v12 }
 0x27e   : > { %3805 = vst.msk [vmem:[%s4889_s6 + $0x48] sm:$0xff] %vm3771_vm4, %v3797_v8  ;;  %3806 = vst.msk [vmem:[%s4889_s6 + $0x50] sm:$0xff] %vm3771_vm4, %v3798_v13  ;;  %v3803_v53 = vadd.f32 %v3795_v59, %v3787_v32 }
 0x27f   : > { %3807 = vst.msk [vmem:[%s4889_s6 + $0x58] sm:$0xff] %vm3771_vm4, %v3799_v19  ;;  %3808 = vst.msk [vmem:[%s4889_s6 + $0x60] sm:$0xff] %vm3771_vm4, %v3800_v40 }
 0x280   : > { %3809 = vst.msk [vmem:[%s4889_s6 + $0x68] sm:$0xff] %vm3771_vm4, %v3801_v58  ;;  %3810 = vst.msk [vmem:[%s4889_s6 + $0x70] sm:$0xff] %vm3771_vm4, %v3802_v50 }
 0x281   : > { %3811 = vst.msk [vmem:[%s4889_s6 + $0x78] sm:$0xff] %vm3771_vm4, %v3803_v53 }
 0x282 PF: > { %s14_s23 = sadd.s32 1, %s4698_s23   ;;  %s5785_s15 = smov %s4670_s16 }
 0x283   : > { %p11_p1 = scmp.ge.s32.totalorder %s14_s23, 10   ;;  %s5786_s16 = smov %s4793_s30 }
 0x284   : > { %s5787_s17 = smov %s4686_s20  ;;  %s5788_s18 = smov %s4690_s21 }
 0x285   : > { %s5789_s19 = smov %s4694_s22  ;;  %s5790_s20 = smov %s5794_s24 }
 0x286   : > { %s5791_s21 = smov %s5798_s25  ;;  %s5792_s22 = smov %s5802_s26 }
 0x287   :  { %13 = sbr.rel (!%p11_p1) target bundleno = 5 (0x5), region = 167 }

</bundles_post_ra>
